<compile_context>
chip_gen: v7x
topology: tpu7x:2x2x1
jax: 0.10.0
libtpu: 0.0.40
codegen_flags: <defaults>
</compile_context>

<pallas_src>
import functools

import numpy as np

import jax
import jax.numpy as jnp
from jax.experimental import pallas as pl
from jax.experimental.pallas import tpu as pltpu

_EPS = 1e-5


def _vmem_limit_bytes():
    # Generation-aware scoped-VMEM ceiling: ~3/4 of physical capacity, capped at 100 MiB
    # (=> ~48 MiB on v7x's 64 MiB, ~96 MiB on v5e/v6e's 128 MiB).
    cap = 64 * 1024 * 1024
    try:
        info = pltpu.get_tpu_info()
        cap = int(getattr(info, "vmem_capacity_bytes", cap) or cap)
    except Exception:
        pass
    return int(min(cap * 3 // 4, 100 * 1024 * 1024))


_VMEM_LIMIT = _vmem_limit_bytes()


def _cparams(sem):
    return pltpu.CompilerParams(dimension_semantics=sem, vmem_limit_bytes=_VMEM_LIMIT)


def _vmem_spec():
    return pl.BlockSpec(memory_space=pltpu.MemorySpace.VMEM)


# ----------------------------------------------------------------------------
# Pallas kernels
# ----------------------------------------------------------------------------
def _mm_stats_kernel(*refs, prologue, multi_k, mask_rows, tile_m, valid_m):
    # Tiled bf16 MXU matmul + exact f32 per-(M-tile, channel) BN partial sums.
    # grid = (M/tm, N/tn, K/tk); K innermost ("arbitrary").
    # prologue: the input block is a *raw* producer output; apply relu(x*scale+shift) first.
    # multi_k: K is tiled -> f32 VMEM accumulator scratch; otherwise single-shot dot.
    if prologue:
        x_ref, w_ref, xs_ref, xt_ref = refs[:4]
        rest = refs[4:]
    else:
        x_ref, w_ref = refs[:2]
        rest = refs[2:]
    y_ref, psum_ref, pssq_ref = rest[:3]
    acc_ref = rest[3] if multi_k else None

    x = x_ref[...]
    if prologue:
        xv = x.astype(jnp.float32) * xs_ref[...] + xt_ref[...]
        xv = jnp.maximum(xv, 0.0)
        if mask_rows:
            # Zero out padded M rows so they do not pollute the BN statistics.
            row = (jax.lax.broadcasted_iota(jnp.int32, (tile_m, 1), 0)
                   + pl.program_id(0) * tile_m)
            xv = jnp.where(row < valid_m, xv, 0.0)
        x = xv.astype(x_ref.dtype)

    part = jnp.dot(x, w_ref[...], preferred_element_type=jnp.float32)

    if multi_k:
        k = pl.program_id(2)

        @pl.when(k == 0)
        def _():
            acc_ref[...] = jnp.zeros_like(acc_ref)

        acc_ref[...] += part

        @pl.when(k == pl.num_programs(2) - 1)
        def _():
            y = acc_ref[...]
            y_ref[...] = y.astype(y_ref.dtype)
            psum_ref[...] = jnp.sum(y, axis=0, keepdims=True)[None]
            pssq_ref[...] = jnp.sum(y * y, axis=0, keepdims=True)[None]
    else:
        y_ref[...] = part.astype(y_ref.dtype)
        psum_ref[...] = jnp.sum(part, axis=0, keepdims=True)[None]
        pssq_ref[...] = jnp.sum(part * part, axis=0, keepdims=True)[None]


def _conv3x3_kernel(xflat_ref, w_ref, mask_ref, y_ref, psum_ref, pssq_ref,
                    abuf, sem, acc_ref, *, offsets, tile_m):
    # Implicit-GEMM 3x3/stride-1/pad-1 conv over the flattened padded activation.
    # xflat_ref lives in HBM (pl.ANY); each of the 9 taps is a row-shifted (tile_m, C) slab
    # fetched by a manually double-buffered DMA and fed to the MXU.
    i = pl.program_id(0)
    base = i * tile_m
    ntap = len(offsets)

    def _copy(t, slot):
        return pltpu.make_async_copy(
            xflat_ref.at[pl.ds(base + offsets[t], tile_m)],
            abuf.at[slot], sem.at[slot])

    pending = _copy(0, 0)
    pending.start()
    acc_ref[...] = jnp.zeros_like(acc_ref)

    for t in range(ntap):  # statically unrolled (9 taps)
        slot = t & 1
        pending.wait()
        if t + 1 < ntap:
            nxt = _copy(t + 1, 1 - slot)
            nxt.start()
        acc_ref[...] += jnp.dot(abuf[slot], w_ref[t],
                                preferred_element_type=jnp.float32)
        if t + 1 < ntap:
            pending = nxt

    y = acc_ref[...]
    y_ref[...] = y.astype(y_ref.dtype)
    m = mask_ref[...]  # (tile_m, 1) validity of each padded-domain output row
    psum_ref[...] = jnp.sum(y * m, axis=0, keepdims=True)[None]
    pssq_ref[...] = jnp.sum(y * y * m, axis=0, keepdims=True)[None]


def _bn_act_kernel(y_ref, scale_ref, shift_ref, o_ref, *, relu):
    # BatchNorm (precomputed per-channel scale/shift) + optional ReLU.
    y = y_ref[...].astype(jnp.float32) * scale_ref[...] + shift_ref[...]
    if relu:
        y = jnp.maximum(y, 0.0)
    o_ref[...] = y.astype(o_ref.dtype)


def _bn_add_relu_kernel(y_ref, scale_ref, shift_ref, res_ref, rscale_ref, rshift_ref, o_ref):
    # Fused BN + residual (with its own deferred per-channel affine) + ReLU.
    y = y_ref[...].astype(jnp.float32) * scale_ref[...] + shift_ref[...]
    r = res_ref[...].astype(jnp.float32) * rscale_ref[...] + rshift_ref[...]
    o_ref[...] = jnp.maximum(y + r, 0.0).astype(o_ref.dtype)


def _head_kernel(x_ref, w_ref, b_ref, gamma_ref, beta_ref, o_ref, *, hw):
    # AdaptiveAvgPool2d((1,1)) + view + Linear + BatchNorm1d (batch stats), fused.
    feat = jnp.sum(x_ref[...].astype(jnp.float32), axis=1) * (1.0 / hw)      # (B, C)
    y = jnp.dot(feat, w_ref[...], preferred_element_type=jnp.float32) + b_ref[...]
    mean = jnp.mean(y, axis=0, keepdims=True)
    var = jnp.mean(jnp.square(y - mean), axis=0, keepdims=True)
    o_ref[...] = (y - mean) * jax.lax.rsqrt(var + _EPS) * gamma_ref[...] + beta_ref[...]


# ----------------------------------------------------------------------------
# Tiling / padding helpers (static Python, shapes only)
# ----------------------------------------------------------------------------
def _round_up(x, m):
    return (x + m - 1) // m * m


def _pad2d(a, rows, cols):
    r, c = a.shape
    if r == rows and c == cols:
        return a
    return jnp.pad(a, ((0, rows - r), (0, cols - c)))


def _pick_tile_m(m):
    if m >= 256:
        for tm in (512, 384, 256):
            if m % tm == 0:
                return tm, m
        return 256, _round_up(m, 256)
    mp = _round_up(m, 16)
    return mp, mp


def _pick_tile_k(k):
    kp = _round_up(k, 128)
    if kp <= 2048:                      # single K step -> no accumulator scratch needed
        return kp, kp
    for tk in (1024, 768, 512, 384, 256, 128):
        if kp % tk == 0:
            return tk, kp
    return 128, kp                      # unreachable: kp is a multiple of 128


def _pick_tile_n(n):
    np_ = _round_up(n, 128)
    # tn=256 keeps nj >= 2 for the deep (small-M) stages so both v7x TensorCores get work.
    if np_ % 256 == 0 and np_ >= 256:
        return 256, np_
    return 128, np_


def _extract_patches(x, kh, kw, stride, pad, pad_value):
    # x: NHWC.  Returns list of kh*kw shifted strided slices, each (B, oh, ow, C).
    B, H, W, C = x.shape
    xp = jnp.pad(x, ((0, 0), (pad, pad), (pad, pad), (0, 0)), constant_values=pad_value)
    oh = (H + 2 * pad - kh) // stride + 1
    ow = (W + 2 * pad - kw) // stride + 1
    cols = []
    for i in range(kh):
        for j in range(kw):
            cols.append(
                xp[:, i:i + stride * (oh - 1) + 1:stride,
                      j:j + stride * (ow - 1) + 1:stride, :])
    return cols, oh, ow


def _bn_scale_shift(psum, pssq, gamma, beta, cout, np_, count):
    # Combine the per-M-tile partial sums into per-channel BN scale/shift (computed once,
    # outside the kernels; padded channels get scale = shift = 0).
    s = jnp.sum(psum[:, 0, :], axis=0)
    q = jnp.sum(pssq[:, 0, :], axis=0)
    mean = s / count
    var = jnp.maximum(q / count - mean * mean, 0.0)
    g = jnp.pad(gamma.astype(jnp.float32), (0, np_ - cout))
    b = jnp.pad(beta.astype(jnp.float32), (0, np_ - cout))
    scale = g * jax.lax.rsqrt(var + _EPS)
    shift = b - mean * scale
    return scale.reshape(1, np_), shift.reshape(1, np_)


# ----------------------------------------------------------------------------
# Conv building blocks (matmul-view convs + fused 3x3 path)
# ----------------------------------------------------------------------------
def _conv_mm(x, w, gamma, beta, *, stride, pad, x_scale=None, x_shift=None):
    # Conv as a tiled matmul.  1x1 convs are direct; spatial convs use im2col.
    # Returns dict with raw bf16 output (Mp, Np), BN scale/shift, tiling metadata.
    kh, kw, cin_w, cout = w.shape
    B, H, W, C = x.shape
    if cin_w != C:
        w = jnp.pad(w, ((0, 0), (0, 0), (0, C - cin_w), (0, 0)))

    if kh == 1 and kw == 1 and pad == 0:
        xs = x if stride == 1 else x[:, ::stride, ::stride, :]
        oh, ow = xs.shape[1], xs.shape[2]
        flat = xs.reshape(B * oh * ow, C)
        K = C
    else:
        cols, oh, ow = _extract_patches(x, kh, kw, stride, pad, 0.0)
        flat = jnp.stack(cols, axis=3).reshape(B * oh * ow, kh * kw * C)
        K = kh * kw * C
        assert x_scale is None  # deferred inputs never feed an im2col conv here

    M = B * oh * ow
    tm, Mp = _pick_tile_m(M)
    tk, Kp = _pick_tile_k(K)
    tn, Np = _pick_tile_n(cout)
    ni, nj, nk = Mp // tm, Np // tn, Kp // tk

    flat = _pad2d(flat.astype(jnp.bfloat16), Mp, Kp)
    w2 = _pad2d(w.reshape(K, cout).astype(jnp.bfloat16), Kp, Np)

    prologue = x_scale is not None
    multi_k = nk > 1
    mask_rows = prologue and (Mp != M)

    in_specs = [pl.BlockSpec((tm, tk), lambda i, j, k: (i, k)),
                pl.BlockSpec((tk, tn), lambda i, j, k: (k, j))]
    args = [flat, w2]
    if prologue:
        in_specs += [pl.BlockSpec((1, tk), lambda i, j, k: (0, k)),
                     pl.BlockSpec((1, tk), lambda i, j, k: (0, k))]
        args += [_pad2d(x_scale.astype(jnp.float32), 1, Kp),
                 _pad2d(x_shift.astype(jnp.float32), 1, Kp)]

    scratch = [pltpu.VMEM((tm, tn), jnp.float32)] if multi_k else []

    y, psum, pssq = pl.pallas_call(
        functools.partial(_mm_stats_kernel, prologue=prologue, multi_k=multi_k,
                          mask_rows=mask_rows, tile_m=tm, valid_m=M),
        out_shape=(
            jax.ShapeDtypeStruct((Mp, Np), jnp.bfloat16),
            jax.ShapeDtypeStruct((ni, 1, Np), jnp.float32),
            jax.ShapeDtypeStruct((ni, 1, Np), jnp.float32),
        ),
        grid=(ni, nj, nk),
        in_specs=in_specs,
        out_specs=(
            pl.BlockSpec((tm, tn), lambda i, j, k: (i, j)),
            pl.BlockSpec((1, 1, tn), lambda i, j, k: (i, 0, j)),
            pl.BlockSpec((1, 1, tn), lambda i, j, k: (i, 0, j)),
        ),
        scratch_shapes=scratch,
        compiler_params=_cparams(("parallel", "parallel", "arbitrary")),
    )(*args)

    scale, shift = _bn_scale_shift(psum, pssq, gamma, beta, cout, Np, float(M))
    return {"y": y, "scale": scale, "shift": shift, "tm": tm, "M": M,
            "shape": (B, oh, ow, Np)}


def _conv3x3_s1(x, w, gamma, beta):
    # Fused implicit-GEMM 3x3 / stride-1 / pad-1 conv (no im2col materialization).
    B, H, W, C = x.shape
    _, _, cin_w, cout = w.shape
    if cin_w != C:
        w = jnp.pad(w, ((0, 0), (0, 0), (0, C - cin_w), (0, 0)))
    Hp, Wp = H + 2, W + 2
    M = B * Hp * Wp                      # rows of the padded output domain we compute
    Mvalid = B * H * W                   # rows that correspond to real output positions
    tm, Mp = _pick_tile_m(M)
    tn, Np = _pick_tile_n(cout)
    ni, nj = Mp // tm, Np // tn

    xp = jnp.pad(x, ((0, 0), (1, 1), (1, 1), (0, 0)))
    xflat = xp.reshape(M, C)
    arows = _round_up(Mp + 2 * Wp + 2, 8)          # slack so tap-shifted DMAs stay in bounds
    xflat = jnp.pad(xflat, ((0, arows - M), (0, 0))).astype(jnp.bfloat16)

    w3 = _pad2d(w.reshape(9 * C, cout).astype(jnp.bfloat16), 9 * C, Np).reshape(9, C, Np)
    offsets = tuple(di * Wp + dj for di in range(3) for dj in range(3))

    # Static row-validity mask over the padded output domain (junk rows excluded from stats).
    ridx = np.arange(Mp)
    valid = (ridx < M) & (((ridx // Wp) % Hp) < H) & ((ridx % Wp) < W)
    mask = jnp.asarray(valid.astype(np.float32).reshape(Mp, 1))

    y, psum, pssq = pl.pallas_call(
        functools.partial(_conv3x3_kernel, offsets=offsets, tile_m=tm),
        out_shape=(
            jax.ShapeDtypeStruct((Mp, Np), jnp.bfloat16),
            jax.ShapeDtypeStruct((ni, 1, Np), jnp.float32),
            jax.ShapeDtypeStruct((ni, 1, Np), jnp.float32),
        ),
        grid=(ni, nj),
        in_specs=[
            pl.BlockSpec(memory_space=pl.ANY),                     # flattened padded act (HBM)
            pl.BlockSpec((9, C, tn), lambda i, j: (0, 0, j)),      # weights per tap
            pl.BlockSpec((tm, 1), lambda i, j: (i, 0)),            # row validity mask
        ],
        out_specs=(
            pl.BlockSpec((tm, tn), lambda i, j: (i, j)),
            pl.BlockSpec((1, 1, tn), lambda i, j: (i, 0, j)),
            pl.BlockSpec((1, 1, tn), lambda i, j: (i, 0, j)),
        ),
        scratch_shapes=[
            pltpu.VMEM((2, tm, C), jnp.bfloat16),    # double-buffered tap slabs
            pltpu.SemaphoreType.DMA((2,)),
            pltpu.VMEM((tm, tn), jnp.float32),       # f32 accumulator
        ],
        compiler_params=_cparams(("parallel", "parallel")),
    )(xflat, w3, mask)

    scale, shift = _bn_scale_shift(psum, pssq, gamma, beta, cout, Np, float(Mvalid))
    y = y[:M].reshape(B, Hp, Wp, Np)[:, :H, :W, :]   # drop junk rows of the padded domain
    return y, scale, shift


def _apply_bn_act(y, scale, shift, *, relu, tile_m):
    Mp, Np = y.shape
    row = pl.BlockSpec((tile_m, Np), lambda m: (m, 0))
    vec = pl.BlockSpec((1, Np), lambda m: (0, 0))
    return pl.pallas_call(
        functools.partial(_bn_act_kernel, relu=relu),
        out_shape=jax.ShapeDtypeStruct((Mp, Np), jnp.bfloat16),
        grid=(Mp // tile_m,),
        in_specs=[row, vec, vec],
        out_specs=row,
        compiler_params=_cparams(("parallel",)),
    )(y, scale, shift)


def _apply_bn_add_relu(y, scale, shift, res, rscale, rshift, *, tile_m):
    Mp, Np = y.shape
    row = pl.BlockSpec((tile_m, Np), lambda m: (m, 0))
    vec = pl.BlockSpec((1, Np), lambda m: (0, 0))
    return pl.pallas_call(
        _bn_add_relu_kernel,
        out_shape=jax.ShapeDtypeStruct((Mp, Np), jnp.bfloat16),
        grid=(Mp // tile_m,),
        in_specs=[row, vec, vec, row, vec, vec],
        out_specs=row,
        compiler_params=_cparams(("parallel",)),
    )(y, scale, shift, res, rscale, rshift)


# ----------------------------------------------------------------------------
# JAX-level layer wrappers
# ----------------------------------------------------------------------------
@functools.partial(jax.jit, static_argnames=("stride", "pad", "relu"))
def conv_bn_act(x, p, *, stride, pad, relu=True):
    # Conv + BN + (ReLU), materialized output (used where the result must exist in HBM).
    r = _conv_mm(x, p["w"], p["gamma"], p["beta"], stride=stride, pad=pad)
    out = _apply_bn_act(r["y"], r["scale"], r["shift"], relu=relu, tile_m=r["tm"])
    B, oh, ow, Np = r["shape"]
    return out[:r["M"]].reshape(B, oh, ow, Np)


@functools.partial(jax.jit, static_argnames=("stride", "pad"))
def conv_bn_defer(x, p, *, stride, pad):
    # Conv whose BN(+ReLU) is *deferred* to the consumer: returns (raw NHWC, scale, shift).
    kh, kw = p["w"].shape[0], p["w"].shape[1]
    if kh == 3 and kw == 3 and stride == 1 and pad == 1:
        return _conv3x3_s1(x, p["w"], p["gamma"], p["beta"])
    r = _conv_mm(x, p["w"], p["gamma"], p["beta"], stride=stride, pad=pad)
    B, oh, ow, Np = r["shape"]
    return r["y"][:r["M"]].reshape(B, oh, ow, Np), r["scale"], r["shift"]


@jax.jit
def conv_bn_add_relu(x, p, residual, res_scale, res_shift, x_scale, x_shift):
    # Bottleneck conv3: 1x1 conv applied to a *deferred* input (relu(x*scale+shift) in the
    # matmul prologue), followed by the fused BN + residual-affine + ReLU epilogue.
    r = _conv_mm(x, p["w"], p["gamma"], p["beta"], stride=1, pad=0,
                 x_scale=x_scale, x_shift=x_shift)
    B, oh, ow, Np = r["shape"]
    Mp = r["y"].shape[0]
    res = _pad2d(residual.reshape(B * oh * ow, residual.shape[-1]).astype(jnp.bfloat16),
                 Mp, Np)
    rs = _pad2d(res_scale.astype(jnp.float32), 1, Np)
    rt = _pad2d(res_shift.astype(jnp.float32), 1, Np)
    out = _apply_bn_add_relu(r["y"], r["scale"], r["shift"], res, rs, rt, tile_m=r["tm"])
    return out[:r["M"]].reshape(B, oh, ow, Np)


@jax.jit
def maxpool_3x3_s2_p1(x):
    # 3x3 / stride-2 / pad-1 max pool as an XLA-fused shifted-slice max in bf16 (per the
    # perf review: avoids materializing a 9x window stack in HBM and the f32 cast).
    B, H, W, C = x.shape
    xp = jnp.pad(x, ((0, 0), (1, 1), (1, 1), (0, 0)), constant_values=-jnp.inf)
    oh = (H + 2 - 3) // 2 + 1
    ow = (W + 2 - 3) // 2 + 1
    out = None
    for di in range(3):
        for dj in range(3):
            s = xp[:, di:di + 2 * (oh - 1) + 1:2, dj:dj + 2 * (ow - 1) + 1:2, :]
            out = s if out is None else jnp.maximum(out, s)
    return out


@jax.jit
def head(x, w, b, gamma, beta):
    # AdaptiveAvgPool2d((1,1)) + view(B, -1) + Linear + BatchNorm1d, fused in one kernel.
    B, H, W, C = x.shape
    if w.shape[0] != C:  # lane-padded channels -> pad weight rows with zeros
        w = jnp.pad(w, ((0, C - w.shape[0]), (0, 0)))
    E = w.shape[1]
    return pl.pallas_call(
        functools.partial(_head_kernel, hw=H * W),
        out_shape=jax.ShapeDtypeStruct((B, E), jnp.float32),
        in_specs=[_vmem_spec()] * 5,
        out_specs=_vmem_spec(),
        compiler_params=pltpu.CompilerParams(vmem_limit_bytes=_VMEM_LIMIT),
    )(x.reshape(B, H * W, C), w.astype(jnp.float32),
      b.reshape(1, E).astype(jnp.float32), gamma.reshape(1, E).astype(jnp.float32),
      beta.reshape(1, E).astype(jnp.float32))


# ----------------------------------------------------------------------------
# Parameters (deterministic synthetic init) and forward pass
# ----------------------------------------------------------------------------
_RESNET152_CFG = [(64, 3, 1), (128, 8, 2), (256, 36, 2), (512, 3, 2)]  # (width, blocks, stride)


def _conv_bn_params(key, kh, kw, cin, cout):
    std = (2.0 / (kh * kw * cin)) ** 0.5
    return {
        "w": std * jax.random.normal(key, (kh, kw, cin, cout), jnp.float32),
        "gamma": jnp.ones((cout,), jnp.float32),
        "beta": jnp.zeros((cout,), jnp.float32),
    }


def build_encoder_params(embed_size, key):
    keys = iter(jax.random.split(key, 256))
    params = {"stem": _conv_bn_params(next(keys), 7, 7, 3, 64)}
    layers = []
    inplanes = 64
    for width, nblocks, stride in _RESNET152_CFG:
        blocks = []
        for bi in range(nblocks):
            s = stride if bi == 0 else 1
            bp = {
                "conv1": _conv_bn_params(next(keys), 1, 1, inplanes, width),
                "conv2": _conv_bn_params(next(keys), 3, 3, width, width),
                "conv3": _conv_bn_params(next(keys), 1, 1, width, width * 4),
                "stride": s,
            }
            if bi == 0 and (s != 1 or inplanes != width * 4):
                bp["down"] = _conv_bn_params(next(keys), 1, 1, inplanes, width * 4)
            blocks.append(bp)
            inplanes = width * 4
        layers.append(blocks)
    params["layers"] = layers
    # Encoder.init_weights: linear.weight ~ N(0, 0.02), linear.bias = 0.
    params["linear_w"] = 0.02 * jax.random.normal(next(keys), (2048, embed_size), jnp.float32)
    params["linear_b"] = jnp.zeros((embed_size,), jnp.float32)
    params["bn_gamma"] = jnp.ones((embed_size,), jnp.float32)   # BatchNorm1d affine defaults
    params["bn_beta"] = jnp.zeros((embed_size,), jnp.float32)
    return params


def encoder_forward(params, images_nchw):
    # images: (B, 3, H, W) NCHW (PyTorch convention) -> NHWC bf16 internally.
    x = jnp.transpose(images_nchw.astype(jnp.bfloat16), (0, 2, 3, 1))

    # ResNet-152 stem.
    x = conv_bn_act(x, params["stem"], stride=2, pad=3, relu=True)
    x = maxpool_3x3_s2_p1(x)

    # Bottleneck stages (3, 8, 36, 3).
    for blocks in params["layers"]:
        for bp in blocks:
            s = bp["stride"]
            # conv1: materialized (its output gets spatially zero-padded for conv2).
            h = conv_bn_act(x, bp["conv1"], stride=1, pad=0, relu=True)
            # conv2: fused 3x3 path (stride 1) or im2col (stride 2); BN+ReLU deferred.
            h, h_scale, h_shift = conv_bn_defer(h, bp["conv2"], stride=s, pad=1)
            # Residual branch: downsample conv's BN is also deferred (applied in epilogue).
            if "down" in bp:
                idn, r_scale, r_shift = conv_bn_defer(x, bp["down"], stride=s, pad=0)
            else:
                idn = x
                cr = x.shape[-1]
                r_scale = jnp.ones((1, cr), jnp.float32)
                r_shift = jnp.zeros((1, cr), jnp.float32)
            # conv3 (+ deferred conv2 BN/ReLU prologue) + BN + residual + ReLU.
            x = conv_bn_add_relu(h, bp["conv3"], idn, r_scale, r_shift, h_scale, h_shift)

    # AdaptiveAvgPool2d((1,1)) + view + Linear + BatchNorm1d (Variable(...data) detach no-op).
    return head(x, params["linear_w"], params["linear_b"],
                params["bn_gamma"], params["bn_beta"])


if __name__ == "__main__":
    key = jax.random.PRNGKey(0)
    pkey, xkey = jax.random.split(key)

    embed_size = 256
    params = build_encoder_params(embed_size, pkey)

    # Small but architecture-consistent input: 64x64 survives the /32 downsampling.
    images = jax.random.normal(xkey, (2, 3, 64, 64), jnp.float32)

    out = encoder_forward(params, images)
    out = jax.block_until_ready(out)

    assert out.shape == (2, embed_size), out.shape
    assert bool(jnp.all(jnp.isfinite(out)))
    print("KERNEL_OK")
</pallas_src>

<mosaic_0001>
module attributes {stable_mosaic.version = 11 : i64} {
  func.func @_mm_stats_kernel(%arg0: i32, %arg1: i32, %arg2: i32, %arg3: memref<512x256xbf16, #tpu.memory_space<vmem>>, %arg4: memref<256x128xbf16, #tpu.memory_space<vmem>>, %arg5: memref<512x128xbf16, #tpu.memory_space<vmem>>, %arg6: memref<1x1x128xf32, #tpu.memory_space<vmem>>, %arg7: memref<1x1x128xf32, #tpu.memory_space<vmem>>) attributes {dimension_semantics = [#tpu.dimension_semantics<parallel>, #tpu.dimension_semantics<parallel>, #tpu.dimension_semantics<arbitrary>], iteration_bounds = array<i64: 4, 1, 1>, scalar_prefetch = 0 : i64, scratch_operands = 0 : i64, tpu.core_type = #tpu.core_type<tc>, window_params = [{transform_indices = @transform_0, window_bounds = array<i64: 512, 256>}, {transform_indices = @transform_1, window_bounds = array<i64: 256, 128>}, {transform_indices = @transform_2, window_bounds = array<i64: 512, 128>}, {transform_indices = @transform_3, window_bounds = array<i64: 1, 1, 128>}, {transform_indices = @transform_4, window_bounds = array<i64: 1, 1, 128>}]} {
    %c0 = arith.constant 0 : index
    %c0_0 = arith.constant 0 : index
    %0 = vector.load %arg3[%c0, %c0_0] : memref<512x256xbf16, #tpu.memory_space<vmem>>, vector<512x256xbf16>
    %c0_1 = arith.constant 0 : index
    %c0_2 = arith.constant 0 : index
    %1 = vector.load %arg4[%c0_1, %c0_2] : memref<256x128xbf16, #tpu.memory_space<vmem>>, vector<256x128xbf16>
    %cst = arith.constant dense<0.000000e+00> : vector<512x128xf32>
    %2 = tpu.matmul %0, %1, %cst {dimension_numbers = #tpu.dot_dimension_numbers<[1], [0], [0], [1], [0, 0, 1, 1], [], []>} : vector<512x256xbf16>, vector<256x128xbf16>, vector<512x128xf32> -> vector<512x128xf32>
    %3 = arith.truncf %2 : vector<512x128xf32> to vector<512x128xbf16>
    %c0_3 = arith.constant 0 : index
    %c0_4 = arith.constant 0 : index
    %4 = vector.load %arg5[%c0_3, %c0_4] : memref<512x128xbf16, #tpu.memory_space<vmem>>, vector<512x128xbf16>
    tpu.vector_store %arg5[%c0_3, %c0_4], %3 {strides = array<i32>} : memref<512x128xbf16, #tpu.memory_space<vmem>>, vector<512x128xbf16>,
    %cst_5 = arith.constant dense<0.000000e+00> : vector<128xf32>
    %5 = vector.multi_reduction <add>, %2, %cst_5 [0] : vector<512x128xf32> to vector<128xf32>
    %6 = vector.shape_cast %5 : vector<128xf32> to vector<1x128xf32>
    %7 = vector.shape_cast %6 : vector<1x128xf32> to vector<1x1x128xf32>
    %c0_6 = arith.constant 0 : index
    %c0_7 = arith.constant 0 : index
    %c0_8 = arith.constant 0 : index
    %8 = vector.load %arg6[%c0_6, %c0_7, %c0_8] : memref<1x1x128xf32, #tpu.memory_space<vmem>>, vector<1x1x128xf32>
    tpu.vector_store %arg6[%c0_6, %c0_7, %c0_8], %7 {strides = array<i32>} : memref<1x1x128xf32, #tpu.memory_space<vmem>>, vector<1x1x128xf32>,
    %9 = arith.mulf %2, %2 : vector<512x128xf32>
    %cst_9 = arith.constant dense<0.000000e+00> : vector<128xf32>
    %10 = vector.multi_reduction <add>, %9, %cst_9 [0] : vector<512x128xf32> to vector<128xf32>
    %11 = vector.shape_cast %10 : vector<128xf32> to vector<1x128xf32>
    %12 = vector.shape_cast %11 : vector<1x128xf32> to vector<1x1x128xf32>
    %c0_10 = arith.constant 0 : index
    %c0_11 = arith.constant 0 : index
    %c0_12 = arith.constant 0 : index
    %13 = vector.load %arg7[%c0_10, %c0_11, %c0_12] : memref<1x1x128xf32, #tpu.memory_space<vmem>>, vector<1x1x128xf32>
    tpu.vector_store %arg7[%c0_10, %c0_11, %c0_12], %12 {strides = array<i32>} : memref<1x1x128xf32, #tpu.memory_space<vmem>>, vector<1x1x128xf32>,
    return
  }
  func.func @transform_0(%arg0: i32, %arg1: i32, %arg2: i32) -> (i32, i32) {
    %c0_i32 = arith.constant 0 : i32
    return %arg0, %arg2 : i32, i32
  }
  func.func @transform_1(%arg0: i32, %arg1: i32, %arg2: i32) -> (i32, i32) {
    %c0_i32 = arith.constant 0 : i32
    return %arg2, %arg1 : i32, i32
  }
  func.func @transform_2(%arg0: i32, %arg1: i32, %arg2: i32) -> (i32, i32) {
    %c0_i32 = arith.constant 0 : i32
    return %arg0, %arg1 : i32, i32
  }
  func.func @transform_3(%arg0: i32, %arg1: i32, %arg2: i32) -> (i32, i32, i32) {
    %c0_i32 = arith.constant 0 : i32
    %c0_i32_0 = arith.constant 0 : i32
    return %arg0, %c0_i32, %arg1 : i32, i32, i32
  }
  func.func @transform_4(%arg0: i32, %arg1: i32, %arg2: i32) -> (i32, i32, i32) {
    %c0_i32 = arith.constant 0 : i32
    %c0_i32_0 = arith.constant 0 : i32
    return %arg0, %c0_i32, %arg1 : i32, i32, i32
  }
}

module attributes {stable_mosaic.version = 11 : i64} {
  func.func @_bn_act_kernel(%arg0: i32, %arg1: memref<512x128xbf16, #tpu.memory_space<vmem>>, %arg2: memref<1x128xf32, #tpu.memory_space<vmem>>, %arg3: memref<1x128xf32, #tpu.memory_space<vmem>>, %arg4: memref<512x128xbf16, #tpu.memory_space<vmem>>) attributes {dimension_semantics = [#tpu.dimension_semantics<parallel>], iteration_bounds = array<i64: 4>, scalar_prefetch = 0 : i64, scratch_operands = 0 : i64, tpu.core_type = #tpu.core_type<tc>, window_params = [{transform_indices = @transform_0, window_bounds = array<i64: 512, 128>}, {pipeline_mode = #tpu.pipeline_mode<synchronous>, transform_indices = @transform_1, window_bounds = array<i64: 1, 128>}, {pipeline_mode = #tpu.pipeline_mode<synchronous>, transform_indices = @transform_2, window_bounds = array<i64: 1, 128>}, {transform_indices = @transform_3, window_bounds = array<i64: 512, 128>}]} {
    %c0 = arith.constant 0 : index
    %c0_0 = arith.constant 0 : index
    %0 = vector.load %arg1[%c0, %c0_0] : memref<512x128xbf16, #tpu.memory_space<vmem>>, vector<512x128xbf16>
    %1 = arith.extf %0 : vector<512x128xbf16> to vector<512x128xf32>
    %c0_1 = arith.constant 0 : index
    %c0_2 = arith.constant 0 : index
    %2 = vector.load %arg2[%c0_1, %c0_2] : memref<1x128xf32, #tpu.memory_space<vmem>>, vector<1x128xf32>
    %3 = vector.broadcast %2 : vector<1x128xf32> to vector<512x128xf32>
    %4 = arith.mulf %1, %3 : vector<512x128xf32>
    %c0_3 = arith.constant 0 : index
    %c0_4 = arith.constant 0 : index
    %5 = vector.load %arg3[%c0_3, %c0_4] : memref<1x128xf32, #tpu.memory_space<vmem>>, vector<1x128xf32>
    %6 = vector.broadcast %5 : vector<1x128xf32> to vector<512x128xf32>
    %7 = arith.addf %4, %6 : vector<512x128xf32>
    %cst = arith.constant 0.000000e+00 : f32
    %8 = vector.broadcast %cst : f32 to vector<512x128xf32>
    %9 = arith.maximumf %7, %8 : vector<512x128xf32>
    %10 = arith.truncf %9 : vector<512x128xf32> to vector<512x128xbf16>
    %c0_5 = arith.constant 0 : index
    %c0_6 = arith.constant 0 : index
    %11 = vector.load %arg4[%c0_5, %c0_6] : memref<512x128xbf16, #tpu.memory_space<vmem>>, vector<512x128xbf16>
    tpu.vector_store %arg4[%c0_5, %c0_6], %10 {strides = array<i32>} : memref<512x128xbf16, #tpu.memory_space<vmem>>, vector<512x128xbf16>,
    return
  }
  func.func @transform_0(%arg0: i32) -> (i32, i32) {
    %c0_i32 = arith.constant 0 : i32
    %c0_i32_0 = arith.constant 0 : i32
    return %arg0, %c0_i32 : i32, i32
  }
  func.func @transform_1(%arg0: i32) -> (i32, i32) {
    %c0_i32 = arith.constant 0 : i32
    %c0_i32_0 = arith.constant 0 : i32
    %c0_i32_1 = arith.constant 0 : i32
    return %c0_i32, %c0_i32_0 : i32, i32
  }
  func.func @transform_2(%arg0: i32) -> (i32, i32) {
    %c0_i32 = arith.constant 0 : i32
    %c0_i32_0 = arith.constant 0 : i32
    %c0_i32_1 = arith.constant 0 : i32
    return %c0_i32, %c0_i32_0 : i32, i32
  }
  func.func @transform_3(%arg0: i32) -> (i32, i32) {
    %c0_i32 = arith.constant 0 : i32
    %c0_i32_0 = arith.constant 0 : i32
    return %arg0, %c0_i32 : i32, i32
  }
}

</mosaic_0001>

<bundles_post_ra>
// kernel: conv_bn_act.3
= control target key start
LH: loop header
LB: loop body
LE: loop exit
PB: predicated region body
PF: predicated region fallthrough
CT: control target
= control target key end

     0   :  { %8 = vsyncpa [#allocation3], 0  ;;  %s1836_s0 = inlined_call_operand.vmem [shape: bf16[2048,128], index: 0, kind: input, shape index: {}]   ;;  %s1837_s1 = inlined_call_operand.vmem [shape: f32[1,128], index: 1, kind: input, shape index: {}]   ;;  %s1838_s2 = inlined_call_operand.vmem [shape: f32[1,128], index: 2, kind: input, shape index: {}]   ;;  %s1839_s3 = inlined_call_operand.hbm [shape: bf16[2048,128], index: 3, kind: output, shape index: {}]  }
   0x1   :  { %10 = vsyncpa [#allocation3 + $0x1], 0  ;;  %s1523_s12 = smov 0   ;;  %s1525_s13 = smov 0  }
   0x2   :  { %s1527_s14 = smov 0   ;;  %s1529_s15 = smov 0  }
   0x3 LB: > { %s1544_s16 = sadd.s32 4294967295, %s1498_s15   ;;  %s902_s17 = sadd.s32 4294967294, %s1498_s15   ;;  %s1498_s15 = sphi %s1529_s15, %s1845_s15   ;;  %s1494_s14 = sphi %s1527_s14, %s1844_s14   ;;  %s1490_s13 = sphi %s1525_s13, %s1843_s13   ;;  %s1486_s12 = sphi %s1523_s12, %s1842_s12  }
   0x4   : > { %s1548_s18 = sadd.s32 1, %s1498_s15   ;;  %s91_s19 = sadd.s32 1, %s1494_s14 }
   0x5   : > { %s88_s20 = ssub.s32 %s1498_s15, %s1548_s18  ;;  %p101_p0 = scmp.ne.s32.totalorder %s1494_s14, %s1490_s13 }
   0x6   : > { %p89_p1 = scmp.eq.s32.totalorder %s88_s20, 0  ;;  %p102_p2 = scmp.eq.s32.totalorder %s1544_s16, 3 }
   0x7   : > { %p107_p3 = scmp.ne.s32.totalorder %s1490_s13, %s1486_s12  ;;  %p108_p4 = scmp.eq.s32.totalorder %s902_s17, 3 }
   0x8   : > { %s1559_s21 = scalar_select %p89_p1, %s1494_s14, %s91_s19  }
   0x9   : > { %p1561_p5 = por %p102_p2, %p101_p0  ;;  %p1565_p6 = por %p108_p4, %p107_p3 }
   0xa   : > { %p905_p7 = scmp.ge.s32.totalorder %s1498_s15, 1  ;;  %p141_p8 = scmp.lt.s32.totalorder %s1498_s15, 5 }
   0xc   : > { %p142_p9 = pnand %p905_p7, %p141_p8 }
   0xd   : > { %s907_s24 = sshll.u32 (!%p142_p9), %s1544_s16, 6  ;;  %v1580_v0 = vld [vmem:[%s1837_s1] ss:$0 sm:$0xff] (!%p142_p9)  ;;  %s162_s4 = sand.u32 (!%p142_p9), 1, %s1490_s13  }
   0xe   : > { %145 = sbr.rel (%p142_p9) target bundleno = 117 (0x75), region = 32  ;;  %p166_p10 = scmp.lt.s32.totalorder (!%p142_p9), %s907_s24, 255  ;;  %v1590_v9 = vld [vmem:[%s1838_s2] ss:$0 sm:$0xff] (!%p142_p9) }
   0xf   : > { %s906_s7 = sshll.u32 (!%p142_p9), %s162_s4, 8  ;;  %s1044_s9 = sshll.u32 (!%p142_p9), %s1544_s16, 12 }
  0x10   : > { %s1614_s8 = scalar_lea.vmem (!%p142_p9), [#allocation2], %s906_s7  ;;  %s1787_s19 = scalar_lea.hbm (!%p142_p9), %s1839_s3, %s1044_s9 }
  0x11   : > { %s840_s10 = sshll.u32 (!%p142_p9), %s1614_s8, 4  ;;  %s1795_s16 = scalar_lea.sflag (!%p142_p9), [#allocation3], %s162_s4  ;;  %s1789_s10 = int_to_ptr.vmem [resolvable:$true] %s840_s10 }
  0x12   : > { %s1436_s20 = scalar_lea.vmem (!%p142_p9), %s1789_s10, 4096 }
  0x13   : > { %p1437_p11 = scmp.ne.s32.totalorder (!%p142_p9), %s1789_s10, %s1436_s20 }
  0x15   : > { %s1847_s24 = smov (!%p166_p10, %s907_s24), 255  ;;  %p1438_p12 = pnand %p1437_p11, %p1561_p5 }
  0x16   : > { %s908_s25 = sshll.u32 %s1847_s24, 2  ;;  %s1500_s24 = smov [#allocation2]  }
  0x17   : > { %s1575_s28 = scalar_lea.vmem %s1836_s0, %s908_s25  ;;  %p1439_p13 = pneg %p1438_p12 }
  0x18   : > { %v1046_v1 = vld [vmem:[%s1575_s28] sm:$0xff]   ;;  %v1333_v2 = vld [vmem:[%s1575_s28 + $0x8] sm:$0xff]   ;;  %v1334_v3 = vld [vmem:[%s1575_s28 + $0x10] sm:$0xff]   ;;  %s1440_s25 = sshll.u32 %s1500_s24, 4  ;;  %s1441_s25 = int_to_ptr.vmem [resolvable:$false] %s1440_s25 }
  0x19   : > { %v1047_v4 = vunpack.c.l.bf16 %v1046_v1  ;;  %v1048_v5 = vunpack.c.h.bf16 %v1046_v1  ;;  %v1051_v6 = vunpack.c.l.bf16 %v1333_v2  ;;  %v1052_v7 = vunpack.c.h.bf16 %v1333_v2  ;;  %v1335_v8 = vld [vmem:[%s1575_s28 + $0x18] sm:$0xff]   ;;  %v1336_v30 = vld [vmem:[%s1575_s28 + $0x20] sm:$0xff]   ;;  %v1337_v35 = vld [vmem:[%s1575_s28 + $0x28] sm:$0xff]   ;;  %s1442_s26 = scalar_lea.vmem %s1441_s25, 8192  ;;  %p1443_p0 = scmp.lt.s32.totalorder %s1789_s10, %s1441_s25 }
  0x1a   : > { %v1055_v10 = vunpack.c.l.bf16 %v1334_v3  ;;  %v1056_v11 = vunpack.c.h.bf16 %v1334_v3  ;;  %v1059_v12 = vunpack.c.l.bf16 %v1335_v8  ;;  %v1060_v13 = vunpack.c.h.bf16 %v1335_v8  ;;  %v1338_v40 = vld [vmem:[%s1575_s28 + $0x30] sm:$0xff]   ;;  %v1339_v45 = vld [vmem:[%s1575_s28 + $0x38] sm:$0xff]   ;;  %v1340_v3 = vld [vmem:[%s1575_s28 + $0x40] sm:$0xff]   ;;  %p1444_p1 = scmp.lt.s32.totalorder %s1442_s26, %s1436_s20 }
  0x1b   : > { %v307_v14 = vmul.f32 %v1047_v4, %v1580_v0  ;;  %v308_v15 = vmul.f32 %v1048_v5, %v1580_v0  ;;  %v309_v16 = vmul.f32 %v1051_v6, %v1580_v0  ;;  %v310_v17 = vmul.f32 %v1052_v7, %v1580_v0 }
  0x1c   : > { %v311_v18 = vmul.f32 %v1055_v10, %v1580_v0  ;;  %v312_v19 = vmul.f32 %v1056_v11, %v1580_v0  ;;  %v313_v20 = vmul.f32 %v1059_v12, %v1580_v0  ;;  %v314_v21 = vmul.f32 %v1060_v13, %v1580_v0  ;;  %v1341_v13 = vld [vmem:[%s1575_s28 + $0x48] sm:$0xff]   ;;  %p1445_p2 = por %p1444_p1, %p1443_p0 }
  0x1d   : > { %v378_v22 = vadd.f32 %v1590_v9, %v307_v14  ;;  %v379_v23 = vadd.f32 %v1590_v9, %v308_v15  ;;  %v380_v24 = vadd.f32 %v1590_v9, %v309_v16  ;;  %v381_v25 = vadd.f32 %v1590_v9, %v310_v17 }
  0x1e   : > { %v382_v26 = vadd.f32 %v1590_v9, %v311_v18  ;;  %v383_v27 = vadd.f32 %v1590_v9, %v312_v19  ;;  %v384_v28 = vadd.f32 %v1590_v9, %v313_v20  ;;  %v385_v29 = vadd.f32 %v1590_v9, %v314_v21  ;;  %v1342_v18 = vld [vmem:[%s1575_s28 + $0x50] sm:$0xff]   ;;  %p1446_p3 = pnand %p1445_p2, %p1439_p13 }
  0x1f   : > { %v442_v31 = vmax.f32 %v378_v22, 0.0  ;;  %v443_v32 = vmax.f32 %v379_v23, 0.0  ;;  %v444_v33 = vmax.f32 %v380_v24, 0.0  ;;  %v445_v34 = vmax.f32 %v381_v25, 0.0  ;;  %v1343_v23 = vld [vmem:[%s1575_s28 + $0x58] sm:$0xff]  }
  0x20   : > { %v446_v36 = vmax.f32 %v382_v26, 0.0  ;;  %v447_v37 = vmax.f32 %v383_v27, 0.0  ;;  %v448_v38 = vmax.f32 %v384_v28, 0.0  ;;  %v449_v39 = vmax.f32 %v385_v29, 0.0 }
  0x21   : > { %v1176_v41 = vpack.c.bf16 %v443_v32, %v442_v31  ;;  %v1181_v42 = vpack.c.bf16 %v445_v34, %v444_v33  ;;  %v1063_v43 = vunpack.c.l.bf16 %v1336_v30  ;;  %v1064_v44 = vunpack.c.h.bf16 %v1336_v30 }
  0x22   : > { %v1186_v46 = vpack.c.bf16 %v447_v37, %v446_v36  ;;  %v1191_v47 = vpack.c.bf16 %v449_v39, %v448_v38  ;;  %v1067_v48 = vunpack.c.l.bf16 %v1337_v35  ;;  %v1068_v49 = vunpack.c.h.bf16 %v1337_v35 }
  0x23   : > { %1177 = vst [vmem:[%s1614_s8] sm:$0xff] %v1176_v41   ;;  %1364 = vst [vmem:[%s1614_s8 + $0x8] sm:$0xff] %v1181_v42   ;;  %v315_v50 = vmul.f32 %v1063_v43, %v1580_v0  ;;  %v316_v51 = vmul.f32 %v1064_v44, %v1580_v0  ;;  %v1071_v52 = vunpack.c.l.bf16 %v1338_v40  ;;  %v1072_v53 = vunpack.c.h.bf16 %v1338_v40  ;;  %v1344_v40 = vld [vmem:[%s1575_s28 + $0x60] sm:$0xff]  }
  0x24   : > { %1365 = vst [vmem:[%s1614_s8 + $0x10] sm:$0xff] %v1186_v46   ;;  %1366 = vst [vmem:[%s1614_s8 + $0x18] sm:$0xff] %v1191_v47   ;;  %v317_v54 = vmul.f32 %v1067_v48, %v1580_v0  ;;  %v318_v55 = vmul.f32 %v1068_v49, %v1580_v0  ;;  %v1075_v56 = vunpack.c.l.bf16 %v1339_v45  ;;  %v1076_v57 = vunpack.c.h.bf16 %v1339_v45 }
  0x25   : > { %v386_v58 = vadd.f32 %v1590_v9, %v315_v50  ;;  %v387_v59 = vadd.f32 %v1590_v9, %v316_v51  ;;  %v319_v60 = vmul.f32 %v1071_v52, %v1580_v0  ;;  %v320_v61 = vmul.f32 %v1072_v53, %v1580_v0  ;;  %v1345_v53 = vld [vmem:[%s1575_s28 + $0x68] sm:$0xff]  }
  0x26   : > { %v388_v62 = vadd.f32 %v1590_v9, %v317_v54  ;;  %v389_v63 = vadd.f32 %v1590_v9, %v318_v55  ;;  %v321_v1 = vmul.f32 %v1075_v56, %v1580_v0  ;;  %v322_v2 = vmul.f32 %v1076_v57, %v1580_v0 }
  0x27   : > { %v450_v4 = vmax.f32 %v386_v58, 0.0  ;;  %v451_v5 = vmax.f32 %v387_v59, 0.0  ;;  %v390_v6 = vadd.f32 %v1590_v9, %v319_v60  ;;  %v391_v7 = vadd.f32 %v1590_v9, %v320_v61  ;;  %v1346_v58 = vld [vmem:[%s1575_s28 + $0x70] sm:$0xff]  }
  0x28   : > { %v452_v8 = vmax.f32 %v388_v62, 0.0  ;;  %v453_v10 = vmax.f32 %v389_v63, 0.0  ;;  %v392_v11 = vadd.f32 %v1590_v9, %v321_v1  ;;  %v393_v12 = vadd.f32 %v1590_v9, %v322_v2  ;;  %v1347_v63 = vld [vmem:[%s1575_s28 + $0x78] sm:$0xff]  }
  0x29   : > { %v1196_v14 = vpack.c.bf16 %v451_v5, %v450_v4  ;;  %v454_v15 = vmax.f32 %v390_v6, 0.0  ;;  %v455_v16 = vmax.f32 %v391_v7, 0.0  ;;  %v1079_v17 = vunpack.c.l.bf16 %v1340_v3 }
  0x2a   : > { %v1201_v19 = vpack.c.bf16 %v453_v10, %v452_v8  ;;  %v456_v20 = vmax.f32 %v392_v11, 0.0  ;;  %v457_v21 = vmax.f32 %v393_v12, 0.0  ;;  %v1080_v22 = vunpack.c.h.bf16 %v1340_v3 }
  0x2b   : > { %1367 = vst [vmem:[%s1614_s8 + $0x20] sm:$0xff] %v1196_v14   ;;  %v1206_v24 = vpack.c.bf16 %v455_v16, %v454_v15  ;;  %v323_v25 = vmul.f32 %v1079_v17, %v1580_v0  ;;  %v1083_v26 = vunpack.c.l.bf16 %v1341_v13  ;;  %v1084_v27 = vunpack.c.h.bf16 %v1341_v13  ;;  %v1348_v14 = vld [vmem:[%s1575_s28 + $0x80] sm:$0xff]  }
  0x2c   : > { %1368 = vst [vmem:[%s1614_s8 + $0x28] sm:$0xff] %v1201_v19   ;;  %v1211_v28 = vpack.c.bf16 %v457_v21, %v456_v20  ;;  %v324_v29 = vmul.f32 %v1080_v22, %v1580_v0  ;;  %v1087_v30 = vunpack.c.l.bf16 %v1342_v18  ;;  %v1088_v31 = vunpack.c.h.bf16 %v1342_v18 }
  0x2d   : > { %1369 = vst [vmem:[%s1614_s8 + $0x30] sm:$0xff] %v1206_v24   ;;  %v394_v32 = vadd.f32 %v1590_v9, %v323_v25  ;;  %v325_v33 = vmul.f32 %v1083_v26, %v1580_v0  ;;  %v326_v34 = vmul.f32 %v1084_v27, %v1580_v0  ;;  %v1091_v35 = vunpack.c.l.bf16 %v1343_v23 }
  0x2e   : > { %1370 = vst [vmem:[%s1614_s8 + $0x38] sm:$0xff] %v1211_v28   ;;  %v395_v36 = vadd.f32 %v1590_v9, %v324_v29  ;;  %v327_v37 = vmul.f32 %v1087_v30, %v1580_v0  ;;  %v328_v38 = vmul.f32 %v1088_v31, %v1580_v0  ;;  %v1092_v39 = vunpack.c.h.bf16 %v1343_v23  ;;  %v1349_v31 = vld [vmem:[%s1575_s28 + $0x88] sm:$0xff]  }
  0x2f   : > { %v458_v41 = vmax.f32 %v394_v32, 0.0  ;;  %v396_v42 = vadd.f32 %v1590_v9, %v325_v33  ;;  %v397_v43 = vadd.f32 %v1590_v9, %v326_v34  ;;  %v329_v44 = vmul.f32 %v1091_v35, %v1580_v0 }
  0x30   : > { %v459_v45 = vmax.f32 %v395_v36, 0.0  ;;  %v398_v46 = vadd.f32 %v1590_v9, %v327_v37  ;;  %v399_v47 = vadd.f32 %v1590_v9, %v328_v38  ;;  %v330_v48 = vmul.f32 %v1092_v39, %v1580_v0  ;;  %v1350_v36 = vld [vmem:[%s1575_s28 + $0x90] sm:$0xff]  }
  0x31   : > { %v460_v49 = vmax.f32 %v396_v42, 0.0  ;;  %v461_v50 = vmax.f32 %v397_v43, 0.0  ;;  %v400_v51 = vadd.f32 %v1590_v9, %v329_v44  ;;  %v1095_v52 = vunpack.c.l.bf16 %v1344_v40 }
  0x32   : > { %v1216_v54 = vpack.c.bf16 %v459_v45, %v458_v41  ;;  %v462_v55 = vmax.f32 %v398_v46, 0.0  ;;  %v463_v56 = vmax.f32 %v399_v47, 0.0  ;;  %v401_v57 = vadd.f32 %v1590_v9, %v330_v48  ;;  %v1351_v41 = vld [vmem:[%s1575_s28 + $0x98] sm:$0xff]  }
  0x33   : > { %v1221_v59 = vpack.c.bf16 %v461_v50, %v460_v49  ;;  %v464_v60 = vmax.f32 %v400_v51, 0.0  ;;  %v1096_v61 = vunpack.c.h.bf16 %v1344_v40  ;;  %v331_v62 = vmul.f32 %v1095_v52, %v1580_v0 }
  0x34   : > { %1371 = vst [vmem:[%s1614_s8 + $0x40] sm:$0xff] %v1216_v54   ;;  %v1226_v1 = vpack.c.bf16 %v463_v56, %v462_v55  ;;  %v465_v2 = vmax.f32 %v401_v57, 0.0  ;;  %v1099_v3 = vunpack.c.l.bf16 %v1345_v53  ;;  %v1100_v4 = vunpack.c.h.bf16 %v1345_v53  ;;  %v1352_v54 = vld [vmem:[%s1575_s28 + $0xa0] sm:$0xff]  }
  0x35   : > { %1372 = vst [vmem:[%s1614_s8 + $0x48] sm:$0xff] %v1221_v59   ;;  %v332_v5 = vmul.f32 %v1096_v61, %v1580_v0  ;;  %v402_v6 = vadd.f32 %v1590_v9, %v331_v62  ;;  %v1103_v7 = vunpack.c.l.bf16 %v1346_v58  ;;  %v1104_v8 = vunpack.c.h.bf16 %v1346_v58 }
  0x36   : > { %1373 = vst [vmem:[%s1614_s8 + $0x50] sm:$0xff] %v1226_v1   ;;  %v1231_v10 = vpack.c.bf16 %v465_v2, %v464_v60  ;;  %v333_v11 = vmul.f32 %v1099_v3, %v1580_v0  ;;  %v334_v12 = vmul.f32 %v1100_v4, %v1580_v0  ;;  %v1107_v13 = vunpack.c.l.bf16 %v1347_v63  ;;  %v1353_v4 = vld [vmem:[%s1575_s28 + $0xa8] sm:$0xff]  }
  0x37   : > { %v403_v15 = vadd.f32 %v1590_v9, %v332_v5  ;;  %v466_v16 = vmax.f32 %v402_v6, 0.0  ;;  %v335_v17 = vmul.f32 %v1103_v7, %v1580_v0  ;;  %v336_v18 = vmul.f32 %v1104_v8, %v1580_v0 }
  0x38   : > { %1374 = vst [vmem:[%s1614_s8 + $0x58] sm:$0xff] %v1231_v10   ;;  %v404_v19 = vadd.f32 %v1590_v9, %v333_v11  ;;  %v405_v20 = vadd.f32 %v1590_v9, %v334_v12  ;;  %v1108_v21 = vunpack.c.h.bf16 %v1347_v63  ;;  %v337_v22 = vmul.f32 %v1107_v13, %v1580_v0 }
  0x39   : > { %v467_v23 = vmax.f32 %v403_v15, 0.0  ;;  %v406_v24 = vadd.f32 %v1590_v9, %v335_v17  ;;  %v407_v25 = vadd.f32 %v1590_v9, %v336_v18  ;;  %v1111_v26 = vunpack.c.l.bf16 %v1348_v14 }
  0x3a   : > { %v468_v27 = vmax.f32 %v404_v19, 0.0  ;;  %v469_v28 = vmax.f32 %v405_v20, 0.0  ;;  %v338_v29 = vmul.f32 %v1108_v21, %v1580_v0  ;;  %v408_v30 = vadd.f32 %v1590_v9, %v337_v22  ;;  %v1355_v19 = vld [vmem:[%s1575_s28 + $0xb8] sm:$0xff]  }
  0x3b   : > { %v1236_v32 = vpack.c.bf16 %v467_v23, %v466_v16  ;;  %v470_v33 = vmax.f32 %v406_v24, 0.0  ;;  %v471_v34 = vmax.f32 %v407_v25, 0.0  ;;  %v1112_v35 = vunpack.c.h.bf16 %v1348_v14  ;;  %v1354_v14 = vld [vmem:[%s1575_s28 + $0xb0] sm:$0xff]  }
  0x3c   : > { %v1241_v37 = vpack.c.bf16 %v469_v28, %v468_v27  ;;  %v409_v38 = vadd.f32 %v1590_v9, %v338_v29  ;;  %v472_v39 = vmax.f32 %v408_v30, 0.0  ;;  %v339_v40 = vmul.f32 %v1111_v26, %v1580_v0 }
  0x3d   : > { %1375 = vst [vmem:[%s1614_s8 + $0x60] sm:$0xff] %v1236_v32   ;;  %v1246_v42 = vpack.c.bf16 %v471_v34, %v470_v33  ;;  %v340_v43 = vmul.f32 %v1112_v35, %v1580_v0  ;;  %v1115_v44 = vunpack.c.l.bf16 %v1349_v31  ;;  %v1116_v45 = vunpack.c.h.bf16 %v1349_v31  ;;  %v1356_v32 = vld [vmem:[%s1575_s28 + $0xc0] sm:$0xff]  }
  0x3e   : > { %1376 = vst [vmem:[%s1614_s8 + $0x68] sm:$0xff] %v1241_v37   ;;  %v473_v46 = vmax.f32 %v409_v38, 0.0  ;;  %v410_v47 = vadd.f32 %v1590_v9, %v339_v40  ;;  %v1119_v48 = vunpack.c.l.bf16 %v1350_v36  ;;  %v1120_v49 = vunpack.c.h.bf16 %v1350_v36 }
  0x3f   : > { %1377 = vst [vmem:[%s1614_s8 + $0x70] sm:$0xff] %v1246_v42   ;;  %v411_v50 = vadd.f32 %v1590_v9, %v340_v43  ;;  %v341_v51 = vmul.f32 %v1115_v44, %v1580_v0  ;;  %v342_v52 = vmul.f32 %v1116_v45, %v1580_v0  ;;  %v1123_v53 = vunpack.c.l.bf16 %v1351_v41  ;;  %v1357_v45 = vld [vmem:[%s1575_s28 + $0xc8] sm:$0xff]  }
  0x40   : > { %v1251_v55 = vpack.c.bf16 %v473_v46, %v472_v39  ;;  %v474_v56 = vmax.f32 %v410_v47, 0.0  ;;  %v343_v57 = vmul.f32 %v1119_v48, %v1580_v0  ;;  %v344_v58 = vmul.f32 %v1120_v49, %v1580_v0 }
  0x41   : > { %v475_v59 = vmax.f32 %v411_v50, 0.0  ;;  %v412_v60 = vadd.f32 %v1590_v9, %v341_v51  ;;  %v413_v61 = vadd.f32 %v1590_v9, %v342_v52  ;;  %v1124_v62 = vunpack.c.h.bf16 %v1351_v41 }
  0x42   : > { %1378 = vst [vmem:[%s1614_s8 + $0x78] sm:$0xff] %v1251_v55   ;;  %v414_v63 = vadd.f32 %v1590_v9, %v343_v57  ;;  %v415_v1 = vadd.f32 %v1590_v9, %v344_v58  ;;  %v345_v2 = vmul.f32 %v1123_v53, %v1580_v0  ;;  %v1127_v3 = vunpack.c.l.bf16 %v1352_v54 }
  0x43   : > { %v1256_v5 = vpack.c.bf16 %v475_v59, %v474_v56  ;;  %v476_v6 = vmax.f32 %v412_v60, 0.0  ;;  %v477_v7 = vmax.f32 %v413_v61, 0.0  ;;  %v346_v8 = vmul.f32 %v1124_v62, %v1580_v0 }
  0x44   : > { %v478_v10 = vmax.f32 %v414_v63, 0.0  ;;  %v479_v11 = vmax.f32 %v415_v1, 0.0  ;;  %v416_v12 = vadd.f32 %v1590_v9, %v345_v2  ;;  %v1128_v13 = vunpack.c.h.bf16 %v1352_v54  ;;  %v1358_v54 = vld [vmem:[%s1575_s28 + $0xd0] sm:$0xff]   ;;  %v1359_v63 = vld [vmem:[%s1575_s28 + $0xd8] sm:$0xff]  }
  0x45   : > { %1379 = vst [vmem:[%s1614_s8 + $0x80] sm:$0xff] %v1256_v5   ;;  %v1261_v15 = vpack.c.bf16 %v477_v7, %v476_v6  ;;  %v417_v16 = vadd.f32 %v1590_v9, %v346_v8  ;;  %v347_v17 = vmul.f32 %v1127_v3, %v1580_v0  ;;  %v1131_v18 = vunpack.c.l.bf16 %v1353_v4 }
  0x46   : > { %v1266_v20 = vpack.c.bf16 %v479_v11, %v478_v10  ;;  %v480_v21 = vmax.f32 %v416_v12, 0.0  ;;  %v348_v22 = vmul.f32 %v1128_v13, %v1580_v0  ;;  %v1132_v23 = vunpack.c.h.bf16 %v1353_v4  ;;  %v1360_v10 = vld [vmem:[%s1575_s28 + $0xe0] sm:$0xff]  }
  0x47   : > { %1380 = vst [vmem:[%s1614_s8 + $0x88] sm:$0xff] %v1261_v15   ;;  %v481_v24 = vmax.f32 %v417_v16, 0.0  ;;  %v418_v25 = vadd.f32 %v1590_v9, %v347_v17  ;;  %v349_v26 = vmul.f32 %v1131_v18, %v1580_v0  ;;  %v1135_v27 = vunpack.c.l.bf16 %v1354_v14 }
  0x48   : > { %1381 = vst [vmem:[%s1614_s8 + $0x90] sm:$0xff] %v1266_v20   ;;  %v419_v28 = vadd.f32 %v1590_v9, %v348_v22  ;;  %v350_v29 = vmul.f32 %v1132_v23, %v1580_v0  ;;  %v1136_v30 = vunpack.c.h.bf16 %v1354_v14  ;;  %v1139_v31 = vunpack.c.l.bf16 %v1355_v19  ;;  %v1361_v23 = vld [vmem:[%s1575_s28 + $0xe8] sm:$0xff]  }
  0x49   : > { %v1271_v33 = vpack.c.bf16 %v481_v24, %v480_v21  ;;  %v482_v34 = vmax.f32 %v418_v25, 0.0  ;;  %v420_v35 = vadd.f32 %v1590_v9, %v349_v26  ;;  %v351_v36 = vmul.f32 %v1135_v27, %v1580_v0 }
  0x4a   : > { %v483_v37 = vmax.f32 %v419_v28, 0.0  ;;  %v421_v38 = vadd.f32 %v1590_v9, %v350_v29  ;;  %v352_v39 = vmul.f32 %v1136_v30, %v1580_v0  ;;  %v1140_v40 = vunpack.c.h.bf16 %v1355_v19 }
  0x4b   : > { %1382 = vst [vmem:[%s1614_s8 + $0x98] sm:$0xff] %v1271_v33   ;;  %v484_v41 = vmax.f32 %v420_v35, 0.0  ;;  %v422_v42 = vadd.f32 %v1590_v9, %v351_v36  ;;  %v353_v43 = vmul.f32 %v1139_v31, %v1580_v0  ;;  %v1143_v44 = vunpack.c.l.bf16 %v1356_v32 }
  0x4c   : > { %v1276_v46 = vpack.c.bf16 %v483_v37, %v482_v34  ;;  %v485_v47 = vmax.f32 %v421_v38, 0.0  ;;  %v423_v48 = vadd.f32 %v1590_v9, %v352_v39  ;;  %v354_v49 = vmul.f32 %v1140_v40, %v1580_v0 }
  0x4d   : > { %v486_v50 = vmax.f32 %v422_v42, 0.0  ;;  %v424_v51 = vadd.f32 %v1590_v9, %v353_v43  ;;  %v1144_v52 = vunpack.c.h.bf16 %v1356_v32  ;;  %v355_v53 = vmul.f32 %v1143_v44, %v1580_v0  ;;  %v1362_v32 = vld [vmem:[%s1575_s28 + $0xf0] sm:$0xff]  }
  0x4e   : > { %1383 = vst [vmem:[%s1614_s8 + $0xa0] sm:$0xff] %v1276_v46   ;;  %v1281_v55 = vpack.c.bf16 %v485_v47, %v484_v41  ;;  %v487_v56 = vmax.f32 %v423_v48, 0.0  ;;  %v425_v57 = vadd.f32 %v1590_v9, %v354_v49  ;;  %v1147_v58 = vunpack.c.l.bf16 %v1357_v45  ;;  %v1363_v41 = vld [vmem:[%s1575_s28 + $0xf8] sm:$0xff]  }
  0x4f   : > { %v488_v59 = vmax.f32 %v424_v51, 0.0  ;;  %v356_v60 = vmul.f32 %v1144_v52, %v1580_v0  ;;  %v426_v61 = vadd.f32 %v1590_v9, %v355_v53  ;;  %v1148_v62 = vunpack.c.h.bf16 %v1357_v45 }
  0x50   : > { %1384 = vst [vmem:[%s1614_s8 + $0xa8] sm:$0xff] %v1281_v55   ;;  %v1286_v1 = vpack.c.bf16 %v487_v56, %v486_v50  ;;  %v489_v2 = vmax.f32 %v425_v57, 0.0  ;;  %v357_v3 = vmul.f32 %v1147_v58, %v1580_v0  ;;  %v1151_v4 = vunpack.c.l.bf16 %v1358_v54 }
  0x51   : > { %v427_v5 = vadd.f32 %v1590_v9, %v356_v60  ;;  %v490_v6 = vmax.f32 %v426_v61, 0.0  ;;  %v358_v7 = vmul.f32 %v1148_v62, %v1580_v0  ;;  %v1152_v8 = vunpack.c.h.bf16 %v1358_v54 }
  0x52   : > { %1385 = vst [vmem:[%s1614_s8 + $0xb0] sm:$0xff] %v1286_v1   ;;  %v1291_v11 = vpack.c.bf16 %v489_v2, %v488_v59  ;;  %v428_v12 = vadd.f32 %v1590_v9, %v357_v3  ;;  %v359_v13 = vmul.f32 %v1151_v4, %v1580_v0  ;;  %v1155_v14 = vunpack.c.l.bf16 %v1359_v63 }
  0x53   : > { %v491_v15 = vmax.f32 %v427_v5, 0.0  ;;  %v429_v16 = vadd.f32 %v1590_v9, %v358_v7  ;;  %v360_v17 = vmul.f32 %v1152_v8, %v1580_v0  ;;  %v1156_v18 = vunpack.c.h.bf16 %v1359_v63 }
  0x54   : > { %1386 = vst [vmem:[%s1614_s8 + $0xb8] sm:$0xff] %v1291_v11   ;;  %v492_v19 = vmax.f32 %v428_v12, 0.0  ;;  %v430_v20 = vadd.f32 %v1590_v9, %v359_v13  ;;  %v361_v21 = vmul.f32 %v1155_v14, %v1580_v0  ;;  %v1159_v22 = vunpack.c.l.bf16 %v1360_v10 }
  0x55   : > { %v1296_v24 = vpack.c.bf16 %v491_v15, %v490_v6  ;;  %v493_v25 = vmax.f32 %v429_v16, 0.0  ;;  %v431_v26 = vadd.f32 %v1590_v9, %v360_v17  ;;  %v362_v27 = vmul.f32 %v1156_v18, %v1580_v0 }
  0x56   : > { %v494_v28 = vmax.f32 %v430_v20, 0.0  ;;  %v432_v29 = vadd.f32 %v1590_v9, %v361_v21  ;;  %v1160_v30 = vunpack.c.h.bf16 %v1360_v10  ;;  %v363_v31 = vmul.f32 %v1159_v22, %v1580_v0 }
  0x57   : > { %1387 = vst [vmem:[%s1614_s8 + $0xc0] sm:$0xff] %v1296_v24   ;;  %v1301_v33 = vpack.c.bf16 %v493_v25, %v492_v19  ;;  %v495_v34 = vmax.f32 %v431_v26, 0.0  ;;  %v433_v35 = vadd.f32 %v1590_v9, %v362_v27  ;;  %v1163_v36 = vunpack.c.l.bf16 %v1361_v23 }
  0x58   : > { %v496_v37 = vmax.f32 %v432_v29, 0.0  ;;  %v364_v38 = vmul.f32 %v1160_v30, %v1580_v0  ;;  %v434_v39 = vadd.f32 %v1590_v9, %v363_v31  ;;  %v1164_v40 = vunpack.c.h.bf16 %v1361_v23 }
  0x59   : > { %1388 = vst [vmem:[%s1614_s8 + $0xc8] sm:$0xff] %v1301_v33   ;;  %v1306_v42 = vpack.c.bf16 %v495_v34, %v494_v28  ;;  %v497_v43 = vmax.f32 %v433_v35, 0.0  ;;  %v365_v44 = vmul.f32 %v1163_v36, %v1580_v0  ;;  %v1167_v45 = vunpack.c.l.bf16 %v1362_v32 }
  0x5a   : > { %v435_v46 = vadd.f32 %v1590_v9, %v364_v38  ;;  %v498_v47 = vmax.f32 %v434_v39, 0.0  ;;  %v366_v48 = vmul.f32 %v1164_v40, %v1580_v0  ;;  %v1168_v49 = vunpack.c.h.bf16 %v1362_v32 }
  0x5b   : > { %1389 = vst [vmem:[%s1614_s8 + $0xd0] sm:$0xff] %v1306_v42   ;;  %v1311_v50 = vpack.c.bf16 %v497_v43, %v496_v37  ;;  %v436_v51 = vadd.f32 %v1590_v9, %v365_v44  ;;  %v367_v52 = vmul.f32 %v1167_v45, %v1580_v0  ;;  %v1171_v53 = vunpack.c.l.bf16 %v1363_v41 }
  0x5c   : > { %v499_v54 = vmax.f32 %v435_v46, 0.0  ;;  %v437_v55 = vadd.f32 %v1590_v9, %v366_v48  ;;  %v368_v56 = vmul.f32 %v1168_v49, %v1580_v0  ;;  %v1172_v57 = vunpack.c.h.bf16 %v1363_v41 }
  0x5d   : > { %1390 = vst [vmem:[%s1614_s8 + $0xd8] sm:$0xff] %v1311_v50   ;;  %v500_v58 = vmax.f32 %v436_v51, 0.0  ;;  %v438_v59 = vadd.f32 %v1590_v9, %v367_v52  ;;  %v369_v60 = vmul.f32 %v1171_v53, %v1580_v0 }
  0x5e   : > { %v1316_v61 = vpack.c.bf16 %v499_v54, %v498_v47  ;;  %v501_v62 = vmax.f32 %v437_v55, 0.0  ;;  %v439_v63 = vadd.f32 %v1590_v9, %v368_v56  ;;  %v370_v1 = vmul.f32 %v1172_v57, %v1580_v0 }
  0x5f   : > { %v502_v2 = vmax.f32 %v438_v59, 0.0  ;;  %v440_v3 = vadd.f32 %v1590_v9, %v369_v60 }
  0x60   : > { %1391 = vst [vmem:[%s1614_s8 + $0xe0] sm:$0xff] %v1316_v61   ;;  %v1321_v4 = vpack.c.bf16 %v501_v62, %v500_v58  ;;  %v503_v5 = vmax.f32 %v439_v63, 0.0  ;;  %v441_v6 = vadd.f32 %v1590_v9, %v370_v1 }
  0x61   : > { %v504_v7 = vmax.f32 %v440_v3, 0.0 }
  0x62   : > { %1392 = vst [vmem:[%s1614_s8 + $0xe8] sm:$0xff] %v1321_v4   ;;  %v1326_v8 = vpack.c.bf16 %v503_v5, %v502_v2  ;;  %v505_v10 = vmax.f32 %v441_v6, 0.0 }
  0x64   : > { %1393 = vst [vmem:[%s1614_s8 + $0xf0] sm:$0xff] %v1326_v8   ;;  %v1331_v0 = vpack.c.bf16 %v505_v10, %v504_v7 }
  0x66   : > { %1394 = vst [vmem:[%s1614_s8 + $0xf8] sm:$0xff] %v1331_v0  }
  0x67   : > { %1449 = shalt.err (!%p1446_p3)
}
  0x68   : > { %s1450_s27 = scalar_lea.hbm %s1787_s19, 4096  ;;  %s1454_s30 = scalar_lea.hbm %s1839_s3, 16384 }
  0x69   : > { %p1451_p4 = scmp.ne.s32.totalorder %s1787_s19, %s1450_s27  ;;  %p1455_p9 = scmp.lt.u32.totalorder %s1787_s19, %s1839_s3 }
  0x6a   : > { %p1456_p10 = scmp.lt.u32.totalorder %s1454_s30, %s1450_s27  ;;  %p1458_p12 = scmp.lt.u32.totalorder %s1450_s27, %s1787_s19 }
  0x6b   : > { %p1452_p7 = pnand %p1451_p4, %p1561_p5 }
  0x6c   : > { %p1457_p11 = por %p1456_p10, %p1455_p9 }
  0x6d   : > { %p1453_p8 = pneg %p1452_p7 }
  0x6e   : > { %p1459_p13 = por %p1458_p12, %p1457_p11 }
  0x70   : > { %p1460_p0 = pnand %p1459_p13, %p1453_p8 }
  0x72   : > { %1463 = shalt.err (!%p1460_p0)
}
  0x73   : > { %s1501_s6 = smov 64   ;;  %s1502_s7 = smov 4  }
  0x74   : > { %1395 = dma.vmem_to_hbm [thread:$0]  (%p1561_p5), %s1789_s10, 4096, %s1787_s19, %s1795_s16, %s1501_s6, %s1501_s6, %s1502_s7  }
  0x75 PF: > { %p1401_p1 = scmp.ge.s32.totalorder %s1498_s15, 2  ;;  %s855_s8 = sand.u32 1, %s1486_s12  }
  0x76   : > { %s856_s9 = scalar_lea.sflag [#allocation3], %s855_s8 }
  0x77   : > { %p1398_p2 = pnand %p1401_p1, %p1565_p6 }
  0x79   : > { %1481 = dma.done.wait (!%p1398_p2), %s856_s9, 4096  }
  0x7a   : > { %1483 = vsyncadd (!%p1398_p2), %s856_s9, 4294963200  ;;  %p13_p3 = scmp.ge.s32.totalorder %s1548_s18, 6   ;;  %s1842_s12 = smov %s1490_s13 }
  0x7b   : > { %s1843_s13 = smov %s1494_s14  ;;  %s1844_s14 = smov %s1559_s21 }
  0x7c   : > { %s1845_s15 = smov %s1548_s18  ;;  %15 = sbr.rel (!%p13_p3) target bundleno = 3 (0x3), region = 67 }
  0x83   :  { %861 = vsyncpa [#allocation3], 1 }
  0x84   :  { %863 = vsyncpa [#allocation3 + $0x1], 1 }

// kernel: conv_bn_act.2
= control target key start
LH: loop header
LB: loop body
LE: loop exit
PB: predicated region body
PF: predicated region fallthrough
CT: control target
= control target key end

     0   :  { %s2443_s15 = smov 0   ;;  %s2445_s16 = smov 0   ;;  %s2863_s0 = inlined_call_operand.vmem [shape: bf16[2048,256], index: 0, kind: input, shape index: {}]   ;;  %s2864_s1 = inlined_call_operand.vmem [shape: bf16[256,128], index: 1, kind: input, shape index: {}]   ;;  %s2865_s2 = inlined_call_operand.vmem [shape: bf16[2048,128], index: 2, kind: output, shape index: {0}]   ;;  %s2866_s3 = inlined_call_operand.vmem [shape: f32[4,1,128], index: 3, kind: output, shape index: {1}]   ;;  %s2867_s4 = inlined_call_operand.vmem [shape: f32[4,1,128], index: 4, kind: output, shape index: {2}]  }
   0x1   :  { %s2447_s17 = smov 0  }
   0x2 LB: > { %s34_s18 = sadd.s32 1, %s2411_s16  ;;  %p1816_p0 = scmp.ge.s32.totalorder %s2415_s17, 1  ;;  %s2415_s17 = sphi %s2447_s17, %s15_s17   ;;  %s2411_s16 = sphi %s2445_s16, %s2869_s16   ;;  %s2407_s15 = sphi %s2443_s15, %s2868_s15  }
   0x3   : > { %p36_p1 = scmp.ge.s32.totalorder %s34_s18, 4  ;;  %p217_p2 = scmp.lt.s32.totalorder %s2415_s17, 5 }
   0x5   : > { %s2871_s18 = smov (%p36_p1, %s34_s18), 0  ;;  %p218_p3 = pnand %p1816_p0, %p217_p2 }
   0x6   : > { %v2281_v0 = vld [vmem:[%s2864_s1] sm:$0xff] (!%p218_p3)   ;;  %v2417_v1 = vmov (!%p218_p3), 0   ;;  %s1817_s21 = sshll.u32 (!%p218_p3), %s2407_s15, 6  ;;  %v2282_v2 = vld [vmem:[%s2864_s1 + $0x8] sm:$0xff] (!%p218_p3)   ;;  %v2283_v3 = vld [vmem:[%s2864_s1 + $0x10] sm:$0xff] (!%p218_p3)   ;;  %p301_p5 = scmp.lt.s32.totalorder (!%p218_p3), %s2407_s15, 3 }
   0x7   : > { %221 = sbr.rel (%p218_p3) target bundleno = 486 (0x1e6), region = 28  ;;  %826 = vmatprep.subr.bf16.mxu0 (!%p218_p3), %v2417_v1  ;;  %2224 = vmatprep.subr.bf16.mxu1 (!%p218_p3), %v2417_v1  ;;  %p273_p4 = scmp.lt.s32.totalorder (!%p218_p3), %s1817_s21, 255  ;;  %v2284_v4 = vld [vmem:[%s2864_s1 + $0x18] sm:$0xff] (!%p218_p3)   ;;  %v2285_v5 = vld [vmem:[%s2864_s1 + $0x20] sm:$0xff] (!%p218_p3)   ;;  %v2286_v7 = vld [vmem:[%s2864_s1 + $0x28] sm:$0xff] (!%p218_p3)  }
   0x8   : > { %827 = vmatpush1.bf16.msra.mxu0 (!%p218_p3), %v2281_v0  ;;  %2240 = vmatpush1.bf16.msra.mxu1 (!%p218_p3), %v2281_v0  ;;  %v2287_v8 = vld [vmem:[%s2864_s1 + $0x30] sm:$0xff] (!%p218_p3)   ;;  %v2288_v9 = vld [vmem:[%s2864_s1 + $0x38] sm:$0xff] (!%p218_p3)   ;;  %v2289_v11 = vld [vmem:[%s2864_s1 + $0x40] sm:$0xff] (!%p218_p3)  }
   0x9   : > { %828 = vmatprep.subr.bf16.mxu0 (!%p218_p3), %v2417_v1  ;;  %2225 = vmatprep.subr.bf16.mxu1 (!%p218_p3), %v2417_v1  ;;  %v2290_v12 = vld [vmem:[%s2864_s1 + $0x48] sm:$0xff] (!%p218_p3)   ;;  %v2291_v13 = vld [vmem:[%s2864_s1 + $0x50] sm:$0xff] (!%p218_p3)   ;;  %v2292_v14 = vld [vmem:[%s2864_s1 + $0x58] sm:$0xff] (!%p218_p3)  }
   0xa   : > { %v2293_v15 = vld [vmem:[%s2864_s1 + $0x60] sm:$0xff] (!%p218_p3)   ;;  %v2294_v16 = vld [vmem:[%s2864_s1 + $0x68] sm:$0xff] (!%p218_p3)   ;;  %v2295_v17 = vld [vmem:[%s2864_s1 + $0x70] sm:$0xff] (!%p218_p3)  }
   0xb   : > { %v2296_v18 = vld [vmem:[%s2864_s1 + $0x78] sm:$0xff] (!%p218_p3)  }
   0xc   : > { %829 = vmatpush1.bf16.msra.mxu0 (!%p218_p3), %v2282_v2  ;;  %2241 = vmatpush1.bf16.msra.mxu1 (!%p218_p3), %v2282_v2 }
   0xd   : > { %830 = vmatprep.subr.bf16.mxu0 (!%p218_p3), %v2417_v1  ;;  %2226 = vmatprep.subr.bf16.mxu1 (!%p218_p3), %v2417_v1 }
   0xe   : > { %s2873_s21 = smov (!%p273_p4, %s1817_s21), 255  ;;  %s2875_s15 = smov (!%p301_p5, %s2407_s15), 3 }
   0xf   : > { %s1968_s28 = sshll.u32 %s2873_s21, 3  ;;  %s1821_s10 = sshll.u32 %s2873_s21, 2 }
  0x10   : > { %831 = vmatpush1.bf16.msra.mxu0 %v2283_v3  ;;  %2242 = vmatpush1.bf16.msra.mxu1 %v2283_v3  ;;  %s2493_s7 = scalar_lea.vmem %s2863_s0, %s1968_s28  ;;  %s2622_s13 = scalar_lea.vmem %s2865_s2, %s1821_s10 }
  0x11   : > { %832 = vmatprep.subr.bf16.mxu0 %v2417_v1  ;;  %2227 = vmatprep.subr.bf16.mxu1 %v2417_v1  ;;  %v2299_v6 = vld [vmem:[%s2493_s7 + $0x4] ss:$8 sps:$4 sm:$0xff]   ;;  %v2297_v19 = vld [vmem:[%s2493_s7] ss:$8 sps:$4 sm:$0xff]   ;;  %v2300_v21 = vld [vmem:[%s2493_s7 + $0x14] ss:$8 sps:$4 sm:$0xff]   ;;  %s306_s14 = scalar_lea.vmem %s2866_s3, %s2875_s15  ;;  %s312_s22 = scalar_lea.vmem %s2867_s4, %s2875_s15 }
  0x12   : > { %858 = vmatprep.mubr.bf16.mxu0 %v2299_v6  ;;  %v2323_v10 = vld [vmem:[%s2493_s7 + $0x104] ss:$8 sps:$4 sm:$0xff]   ;;  %v2321_v20 = vld [vmem:[%s2493_s7 + $0x100] ss:$8 sps:$4 sm:$0xff]   ;;  %v2327_v22 = vld [vmem:[%s2493_s7 + $0x114] ss:$8 sps:$4 sm:$0xff]  }
  0x13   : > { %986 = vmatprep.mubr.bf16.mxu1 %v2323_v10  ;;  %v2302_v23 = vld [vmem:[%s2493_s7 + $0x10] ss:$8 sps:$4 sm:$0xff]   ;;  %v2303_v25 = vld [vmem:[%s2493_s7 + $0x24] ss:$8 sps:$4 sm:$0xff]   ;;  %v2305_v27 = vld [vmem:[%s2493_s7 + $0x20] ss:$8 sps:$4 sm:$0xff]  }
  0x14   : > { %833 = vmatpush1.bf16.msra.mxu0 %v2284_v4  ;;  %2243 = vmatpush1.bf16.msra.mxu1 %v2284_v4  ;;  %v2329_v24 = vld [vmem:[%s2493_s7 + $0x110] ss:$8 sps:$4 sm:$0xff]   ;;  %v2333_v26 = vld [vmem:[%s2493_s7 + $0x124] ss:$8 sps:$4 sm:$0xff]   ;;  %v2335_v28 = vld [vmem:[%s2493_s7 + $0x120] ss:$8 sps:$4 sm:$0xff]  }
  0x15   : > { %834 = vmatprep.subr.bf16.mxu0 %v2417_v1  ;;  %2228 = vmatprep.subr.bf16.mxu1 %v2417_v1  ;;  %v2306_v29 = vld [vmem:[%s2493_s7 + $0x34] ss:$8 sps:$4 sm:$0xff]   ;;  %v2308_v31 = vld [vmem:[%s2493_s7 + $0x30] ss:$8 sps:$4 sm:$0xff]   ;;  %v2309_v33 = vld [vmem:[%s2493_s7 + $0x44] ss:$8 sps:$4 sm:$0xff]  }
  0x16   : > { %v2339_v30 = vld [vmem:[%s2493_s7 + $0x134] ss:$8 sps:$4 sm:$0xff]   ;;  %v2341_v32 = vld [vmem:[%s2493_s7 + $0x130] ss:$8 sps:$4 sm:$0xff]   ;;  %v2345_v34 = vld [vmem:[%s2493_s7 + $0x144] ss:$8 sps:$4 sm:$0xff]  }
  0x17   : > { %v2311_v35 = vld [vmem:[%s2493_s7 + $0x40] ss:$8 sps:$4 sm:$0xff]   ;;  %v2312_v37 = vld [vmem:[%s2493_s7 + $0x54] ss:$8 sps:$4 sm:$0xff]   ;;  %v2314_v39 = vld [vmem:[%s2493_s7 + $0x50] ss:$8 sps:$4 sm:$0xff]  }
  0x18   : > { %835 = vmatpush1.bf16.msra.mxu0 %v2285_v5  ;;  %2244 = vmatpush1.bf16.msra.mxu1 %v2285_v5  ;;  %v2347_v36 = vld [vmem:[%s2493_s7 + $0x140] ss:$8 sps:$4 sm:$0xff]   ;;  %v2351_v38 = vld [vmem:[%s2493_s7 + $0x154] ss:$8 sps:$4 sm:$0xff]   ;;  %v2353_v40 = vld [vmem:[%s2493_s7 + $0x150] ss:$8 sps:$4 sm:$0xff]  }
  0x19   : > { %836 = vmatprep.subr.bf16.mxu0 %v2417_v1  ;;  %2229 = vmatprep.subr.bf16.mxu1 %v2417_v1  ;;  %v2315_v41 = vld [vmem:[%s2493_s7 + $0x64] ss:$8 sps:$4 sm:$0xff]   ;;  %v2317_v43 = vld [vmem:[%s2493_s7 + $0x60] ss:$8 sps:$4 sm:$0xff]   ;;  %v2318_v45 = vld [vmem:[%s2493_s7 + $0x74] ss:$8 sps:$4 sm:$0xff]  }
  0x1a   : > { %v2357_v42 = vld [vmem:[%s2493_s7 + $0x164] ss:$8 sps:$4 sm:$0xff]   ;;  %v2359_v44 = vld [vmem:[%s2493_s7 + $0x160] ss:$8 sps:$4 sm:$0xff]   ;;  %v2363_v46 = vld [vmem:[%s2493_s7 + $0x174] ss:$8 sps:$4 sm:$0xff]  }
  0x1b   : > { %v2320_v47 = vld [vmem:[%s2493_s7 + $0x70] ss:$8 sps:$4 sm:$0xff]   ;;  %v2324_v49 = vld [vmem:[%s2493_s7 + $0x84] ss:$8 sps:$4 sm:$0xff]   ;;  %v2326_v51 = vld [vmem:[%s2493_s7 + $0x80] ss:$8 sps:$4 sm:$0xff]  }
  0x1c   : > { %837 = vmatpush1.bf16.msra.mxu0 %v2286_v7  ;;  %2245 = vmatpush1.bf16.msra.mxu1 %v2286_v7  ;;  %v2365_v48 = vld [vmem:[%s2493_s7 + $0x170] ss:$8 sps:$4 sm:$0xff]   ;;  %v2369_v50 = vld [vmem:[%s2493_s7 + $0x184] ss:$8 sps:$4 sm:$0xff]   ;;  %v2371_v52 = vld [vmem:[%s2493_s7 + $0x180] ss:$8 sps:$4 sm:$0xff]  }
  0x1d   : > { %838 = vmatprep.subr.bf16.mxu0 %v2417_v1  ;;  %2230 = vmatprep.subr.bf16.mxu1 %v2417_v1  ;;  %v2330_v53 = vld [vmem:[%s2493_s7 + $0x94] ss:$8 sps:$4 sm:$0xff]   ;;  %v2332_v55 = vld [vmem:[%s2493_s7 + $0x90] ss:$8 sps:$4 sm:$0xff]   ;;  %v2336_v57 = vld [vmem:[%s2493_s7 + $0xa4] ss:$8 sps:$4 sm:$0xff]  }
  0x1e   : > { %v2372_v54 = vld [vmem:[%s2493_s7 + $0x194] ss:$8 sps:$4 sm:$0xff]   ;;  %v2374_v56 = vld [vmem:[%s2493_s7 + $0x190] ss:$8 sps:$4 sm:$0xff]   ;;  %v2375_v58 = vld [vmem:[%s2493_s7 + $0x1a4] ss:$8 sps:$4 sm:$0xff]  }
  0x1f   : > { %v2338_v59 = vld [vmem:[%s2493_s7 + $0xa0] ss:$8 sps:$4 sm:$0xff]   ;;  %v2342_v61 = vld [vmem:[%s2493_s7 + $0xb4] ss:$8 sps:$4 sm:$0xff]   ;;  %v2344_v63 = vld [vmem:[%s2493_s7 + $0xb0] ss:$8 sps:$4 sm:$0xff]  }
  0x20   : > { %839 = vmatpush1.bf16.msra.mxu0 %v2287_v8  ;;  %2246 = vmatpush1.bf16.msra.mxu1 %v2287_v8  ;;  %v2377_v60 = vld [vmem:[%s2493_s7 + $0x1a0] ss:$8 sps:$4 sm:$0xff]   ;;  %v2378_v62 = vld [vmem:[%s2493_s7 + $0x1b4] ss:$8 sps:$4 sm:$0xff]   ;;  %v2380_v0 = vld [vmem:[%s2493_s7 + $0x1b0] ss:$8 sps:$4 sm:$0xff]  }
  0x21   : > { %840 = vmatprep.subr.bf16.mxu0 %v2417_v1  ;;  %2231 = vmatprep.subr.bf16.mxu1 %v2417_v1  ;;  %v2381_v2 = vld [vmem:[%s2493_s7 + $0x1c4] ss:$8 sps:$4 sm:$0xff]   ;;  %v2350_v3 = vld [vmem:[%s2493_s7 + $0xc0] ss:$8 sps:$4 sm:$0xff]   ;;  %v2354_v5 = vld [vmem:[%s2493_s7 + $0xd4] ss:$8 sps:$4 sm:$0xff]  }
  0x22   : > { %v2383_v4 = vld [vmem:[%s2493_s7 + $0x1c0] ss:$8 sps:$4 sm:$0xff]   ;;  %v2384_v6 = vld [vmem:[%s2493_s7 + $0x1d4] ss:$8 sps:$4 sm:$0xff]   ;;  %v2356_v7 = vld [vmem:[%s2493_s7 + $0xd0] ss:$8 sps:$4 sm:$0xff]  }
  0x23   : > { %v2386_v8 = vld [vmem:[%s2493_s7 + $0x1d0] ss:$8 sps:$4 sm:$0xff]   ;;  %v2387_v10 = vld [vmem:[%s2493_s7 + $0x1e4] ss:$8 sps:$4 sm:$0xff]  }
  0x24   : > { %841 = vmatpush1.bf16.msra.mxu0 %v2288_v9  ;;  %2247 = vmatpush1.bf16.msra.mxu1 %v2288_v9  ;;  %v2360_v9 = vld [vmem:[%s2493_s7 + $0xe4] ss:$8 sps:$4 sm:$0xff]  }
  0x25   : > { %842 = vmatprep.subr.bf16.mxu0 %v2417_v1  ;;  %2232 = vmatprep.subr.bf16.mxu1 %v2417_v1 }
  0x28   : > { %843 = vmatpush1.bf16.msra.mxu0 %v2289_v11  ;;  %2248 = vmatpush1.bf16.msra.mxu1 %v2289_v11  ;;  %v2362_v11 = vld [vmem:[%s2493_s7 + $0xe0] ss:$8 sps:$4 sm:$0xff]  }
  0x29   : > { %844 = vmatprep.subr.bf16.mxu0 %v2417_v1  ;;  %2233 = vmatprep.subr.bf16.mxu1 %v2417_v1 }
  0x2c   : > { %845 = vmatpush1.bf16.msra.mxu0 %v2290_v12  ;;  %2249 = vmatpush1.bf16.msra.mxu1 %v2290_v12  ;;  %v2389_v12 = vld [vmem:[%s2493_s7 + $0x1e0] ss:$8 sps:$4 sm:$0xff]  }
  0x2d   : > { %846 = vmatprep.subr.bf16.mxu0 %v2417_v1  ;;  %2234 = vmatprep.subr.bf16.mxu1 %v2417_v1 }
  0x30   : > { %847 = vmatpush1.bf16.msra.mxu0 %v2291_v13  ;;  %2250 = vmatpush1.bf16.msra.mxu1 %v2291_v13  ;;  %v2366_v13 = vld [vmem:[%s2493_s7 + $0xf4] ss:$8 sps:$4 sm:$0xff]  }
  0x31   : > { %848 = vmatprep.subr.bf16.mxu0 %v2417_v1  ;;  %2235 = vmatprep.subr.bf16.mxu1 %v2417_v1 }
  0x34   : > { %849 = vmatpush1.bf16.msra.mxu0 %v2292_v14  ;;  %2251 = vmatpush1.bf16.msra.mxu1 %v2292_v14  ;;  %v2390_v14 = vld [vmem:[%s2493_s7 + $0x1f4] ss:$8 sps:$4 sm:$0xff]  }
  0x35   : > { %850 = vmatprep.subr.bf16.mxu0 %v2417_v1  ;;  %2236 = vmatprep.subr.bf16.mxu1 %v2417_v1 }
  0x38   : > { %851 = vmatpush1.bf16.msra.mxu0 %v2293_v15  ;;  %2252 = vmatpush1.bf16.msra.mxu1 %v2293_v15  ;;  %v2368_v15 = vld [vmem:[%s2493_s7 + $0xf0] ss:$8 sps:$4 sm:$0xff]  }
  0x39   : > { %852 = vmatprep.subr.bf16.mxu0 %v2417_v1  ;;  %2237 = vmatprep.subr.bf16.mxu1 %v2417_v1 }
  0x3c   : > { %853 = vmatpush1.bf16.msra.mxu0 %v2294_v16  ;;  %2253 = vmatpush1.bf16.msra.mxu1 %v2294_v16  ;;  %v2392_v16 = vld [vmem:[%s2493_s7 + $0x1f0] ss:$8 sps:$4 sm:$0xff]  }
  0x3d   : > { %854 = vmatprep.subr.bf16.mxu0 %v2417_v1  ;;  %2238 = vmatprep.subr.bf16.mxu1 %v2417_v1 }
  0x40   : > { %855 = vmatpush1.bf16.msra.mxu0 %v2295_v17  ;;  %2254 = vmatpush1.bf16.msra.mxu1 %v2295_v17 }
  0x41   : > { %856 = vmatprep.subr.bf16.mxu0 %v2417_v1  ;;  %2239 = vmatprep.subr.bf16.mxu1 %v2417_v1  ;;  %v2348_v1 = vld [vmem:[%s2493_s7 + $0xc4] ss:$8 sps:$4 sm:$0xff]  }
  0x44   : > { %857 = vmatpush1.bf16.msra.mxu0 %v2296_v18  ;;  %2255 = vmatpush1.bf16.msra.mxu1 %v2296_v18 }
  0x47   : > { %859 = vmatmul.mubr.bf16.vlgmr.msra.gmra.mrb[0].mxu0 %v2297_v19  ;;  %987 = vmatmul.mubr.bf16.vlgmr.msra.gmra.mrb[0].mxu1 %v2321_v20 }
  0x48   : > { %866 = vmatprep.mubr.bf16.mxu0 %v2300_v21  ;;  %994 = vmatprep.mubr.bf16.mxu1 %v2327_v22 }
  0x4f   : > { %867 = vmatmul.mubr.bf16.gmra.mrb[4].mxu0 %v2302_v23  ;;  %995 = vmatmul.mubr.bf16.gmra.mrb[4].mxu1 %v2329_v24 }
  0x50   : > { %874 = vmatprep.mubr.bf16.mxu0 %v2303_v25  ;;  %1002 = vmatprep.mubr.bf16.mxu1 %v2333_v26 }
  0x57   : > { %875 = vmatmul.mubr.bf16.gmra.mrb[8].mxu0 %v2305_v27  ;;  %1003 = vmatmul.mubr.bf16.gmra.mrb[8].mxu1 %v2335_v28 }
  0x58   : > { %882 = vmatprep.mubr.bf16.mxu0 %v2306_v29  ;;  %1010 = vmatprep.mubr.bf16.mxu1 %v2339_v30 }
  0x5f   : > { %883 = vmatmul.mubr.bf16.gmra.mrb[12].mxu0 %v2308_v31  ;;  %1011 = vmatmul.mubr.bf16.gmra.mrb[12].mxu1 %v2341_v32 }
  0x60   : > { %890 = vmatprep.mubr.bf16.mxu0 %v2309_v33  ;;  %1018 = vmatprep.mubr.bf16.mxu1 %v2345_v34 }
  0x67   : > { %891 = vmatmul.mubr.bf16.gmra.mrb[16].mxu0 %v2311_v35  ;;  %1019 = vmatmul.mubr.bf16.gmra.mrb[16].mxu1 %v2347_v36 }
  0x68   : > { %898 = vmatprep.mubr.bf16.mxu0 %v2312_v37  ;;  %1026 = vmatprep.mubr.bf16.mxu1 %v2351_v38 }
  0x6f   : > { %899 = vmatmul.mubr.bf16.gmra.mrb[20].mxu0 %v2314_v39  ;;  %1027 = vmatmul.mubr.bf16.gmra.mrb[20].mxu1 %v2353_v40 }
  0x70   : > { %906 = vmatprep.mubr.bf16.mxu0 %v2315_v41  ;;  %1034 = vmatprep.mubr.bf16.mxu1 %v2357_v42 }
  0x77   : > { %907 = vmatmul.mubr.bf16.gmra.mrb[24].mxu0 %v2317_v43  ;;  %1035 = vmatmul.mubr.bf16.gmra.mrb[24].mxu1 %v2359_v44 }
  0x78   : > { %914 = vmatprep.mubr.bf16.mxu0 %v2318_v45  ;;  %1042 = vmatprep.mubr.bf16.mxu1 %v2363_v46 }
  0x7f   : > { %915 = vmatmul.mubr.bf16.gmra.mrb[28].mxu0 %v2320_v47  ;;  %1043 = vmatmul.mubr.bf16.gmra.mrb[28].mxu1 %v2365_v48 }
  0x80   : > { %922 = vmatprep.mubr.bf16.mxu0 %v2324_v49  ;;  %1050 = vmatprep.mubr.bf16.mxu1 %v2369_v50 }
  0x87   : > { %923 = vmatmul.mubr.bf16.gmra.mrb[32].mxu0 %v2326_v51  ;;  %1051 = vmatmul.mubr.bf16.gmra.mrb[32].mxu1 %v2371_v52 }
  0x88   : > { %930 = vmatprep.mubr.bf16.mxu0 %v2330_v53  ;;  %1058 = vmatprep.mubr.bf16.mxu1 %v2372_v54 }
  0x8f   : > { %931 = vmatmul.mubr.bf16.gmra.mrb[36].mxu0 %v2332_v55  ;;  %1059 = vmatmul.mubr.bf16.gmra.mrb[36].mxu1 %v2374_v56 }
  0x90   : > { %938 = vmatprep.mubr.bf16.mxu0 %v2336_v57  ;;  %1066 = vmatprep.mubr.bf16.mxu1 %v2375_v58 }
  0x97   : > { %939 = vmatmul.mubr.bf16.gmra.mrb[40].mxu0 %v2338_v59  ;;  %1067 = vmatmul.mubr.bf16.gmra.mrb[40].mxu1 %v2377_v60 }
  0x98   : > { %946 = vmatprep.mubr.bf16.mxu0 %v2342_v61  ;;  %1074 = vmatprep.mubr.bf16.mxu1 %v2378_v62 }
  0x9f   : > { %947 = vmatmul.mubr.bf16.gmra.mrb[44].mxu0 %v2344_v63  ;;  %1075 = vmatmul.mubr.bf16.gmra.mrb[44].mxu1 %v2380_v0 }
  0xa0   : > { %954 = vmatprep.mubr.bf16.mxu0 %v2348_v1  ;;  %1082 = vmatprep.mubr.bf16.mxu1 %v2381_v2 }
  0xa7   : > { %955 = vmatmul.mubr.bf16.gmra.mrb[48].mxu0 %v2350_v3  ;;  %1083 = vmatmul.mubr.bf16.gmra.mrb[48].mxu1 %v2383_v4 }
  0xa8   : > { %962 = vmatprep.mubr.bf16.mxu0 %v2354_v5  ;;  %1090 = vmatprep.mubr.bf16.mxu1 %v2384_v6 }
  0xaf   : > { %963 = vmatmul.mubr.bf16.gmra.mrb[52].mxu0 %v2356_v7  ;;  %1091 = vmatmul.mubr.bf16.gmra.mrb[52].mxu1 %v2386_v8 }
  0xb0   : > { %970 = vmatprep.mubr.bf16.mxu0 %v2360_v9  ;;  %1098 = vmatprep.mubr.bf16.mxu1 %v2387_v10 }
  0xb7   : > { %971 = vmatmul.mubr.bf16.gmra.mrb[56].mxu0 %v2362_v11  ;;  %1099 = vmatmul.mubr.bf16.gmra.mrb[56].mxu1 %v2389_v12 }
  0xb8   : > { %978 = vmatprep.mubr.bf16.mxu0 %v2366_v13  ;;  %1106 = vmatprep.mubr.bf16.mxu1 %v2390_v14 }
  0xbf   : > { %979 = vmatmul.mubr.bf16.gmra.mrb[60].mxu0 %v2368_v15  ;;  %1107 = vmatmul.mubr.bf16.gmra.mrb[60].mxu1 %v2392_v16 }
 0x11a   : > { %v860_v17 = vpop.f32.mrb[0].mxu0  ;;  %v2617_v18 = vpop.f32.mrb[0].mxu1 }
 0x11b   : > { %v862_v19 = vpop.f32.mrb[1].mxu0  ;;  %v990_v20 = vpop.f32.mrb[1].mxu1  ;;  %v1505_v21 = vmul.f32 %v860_v17, %v860_v17 }
 0x11c   : > { %v863_v22 = vpop.f32.mrb[2].mxu0  ;;  %v2624_v23 = vpop.f32.mrb[2].mxu1 }
 0x11d   : > { %v2036_v24 = vpack.c.bf16 %v863_v22, %v860_v17  ;;  %v1435_v25 = vadd.f32 %v863_v22, %v860_v17  ;;  %v1506_v26 = vmul.f32 %v863_v22, %v863_v22  ;;  %v865_v27 = vpop.f32.mrb[3].mxu0  ;;  %v2116_v28 = vpack.c.bf16 %v2624_v23, %v2617_v18  ;;  %v993_v29 = vpop.f32.mrb[3].mxu1 }
 0x11f   : > { %2037 = vst [vmem:[%s2622_s13] sm:$0xff] %v2036_v24   ;;  %v1569_v30 = vadd.f32 %v1506_v26, %v1505_v21  ;;  %2208 = vst [vmem:[%s2622_s13 + $0x80] sm:$0xff] %v2116_v28  }
 0x122   : > { %v868_v31 = vpop.f32.mrb[4].mxu0  ;;  %v2630_v32 = vpop.f32.mrb[4].mxu1 }
 0x123   : > { %v1436_v33 = vadd.f32 %v1435_v25, %v868_v31  ;;  %v1507_v34 = vmul.f32 %v868_v31, %v868_v31  ;;  %v870_v35 = vpop.f32.mrb[5].mxu0  ;;  %v998_v36 = vpop.f32.mrb[5].mxu1 }
 0x124   : > { %v871_v37 = vpop.f32.mrb[6].mxu0  ;;  %v2632_v38 = vpop.f32.mrb[6].mxu1 }
 0x125   : > { %v1570_v39 = vadd.f32 %v1569_v30, %v1507_v34  ;;  %v2041_v40 = vpack.c.bf16 %v871_v37, %v868_v31  ;;  %v1437_v41 = vadd.f32 %v1436_v33, %v871_v37  ;;  %v1508_v42 = vmul.f32 %v871_v37, %v871_v37  ;;  %v873_v43 = vpop.f32.mrb[7].mxu0  ;;  %v1001_v44 = vpop.f32.mrb[7].mxu1 }
 0x126   : > { %v2121_v45 = vpack.c.bf16 %v2632_v38, %v2630_v32 }
 0x127   : > { %2193 = vst [vmem:[%s2622_s13 + $0x8] sm:$0xff] %v2041_v40   ;;  %v1571_v46 = vadd.f32 %v1570_v39, %v1508_v42 }
 0x128   : > { %2209 = vst [vmem:[%s2622_s13 + $0x88] sm:$0xff] %v2121_v45  }
 0x12a   : > { %v876_v47 = vpop.f32.mrb[8].mxu0  ;;  %v2638_v48 = vpop.f32.mrb[8].mxu1 }
 0x12b   : > { %v1438_v49 = vadd.f32 %v1437_v41, %v876_v47  ;;  %v1509_v50 = vmul.f32 %v876_v47, %v876_v47  ;;  %v878_v51 = vpop.f32.mrb[9].mxu0  ;;  %v1006_v52 = vpop.f32.mrb[9].mxu1 }
 0x12c   : > { %v879_v53 = vpop.f32.mrb[10].mxu0  ;;  %v2640_v54 = vpop.f32.mrb[10].mxu1 }
 0x12d   : > { %v1572_v55 = vadd.f32 %v1571_v46, %v1509_v50  ;;  %v2046_v56 = vpack.c.bf16 %v879_v53, %v876_v47  ;;  %v1439_v57 = vadd.f32 %v1438_v49, %v879_v53  ;;  %v1510_v58 = vmul.f32 %v879_v53, %v879_v53  ;;  %v881_v59 = vpop.f32.mrb[11].mxu0  ;;  %v1009_v60 = vpop.f32.mrb[11].mxu1 }
 0x12e   : > { %v2126_v61 = vpack.c.bf16 %v2640_v54, %v2638_v48 }
 0x12f   : > { %2194 = vst [vmem:[%s2622_s13 + $0x10] sm:$0xff] %v2046_v56   ;;  %v1573_v62 = vadd.f32 %v1572_v55, %v1510_v58 }
 0x130   : > { %2210 = vst [vmem:[%s2622_s13 + $0x90] sm:$0xff] %v2126_v61  }
 0x132   : > { %v884_v63 = vpop.f32.mrb[12].mxu0  ;;  %v2646_v0 = vpop.f32.mrb[12].mxu1 }
 0x133   : > { %v1440_v1 = vadd.f32 %v1439_v57, %v884_v63  ;;  %v1511_v2 = vmul.f32 %v884_v63, %v884_v63  ;;  %v886_v3 = vpop.f32.mrb[13].mxu0  ;;  %v1014_v4 = vpop.f32.mrb[13].mxu1 }
 0x134   : > { %v887_v5 = vpop.f32.mrb[14].mxu0  ;;  %v2648_v6 = vpop.f32.mrb[14].mxu1 }
 0x135   : > { %v1574_v7 = vadd.f32 %v1573_v62, %v1511_v2  ;;  %v2051_v8 = vpack.c.bf16 %v887_v5, %v884_v63  ;;  %v1441_v9 = vadd.f32 %v1440_v1, %v887_v5  ;;  %v1512_v10 = vmul.f32 %v887_v5, %v887_v5  ;;  %v889_v11 = vpop.f32.mrb[15].mxu0  ;;  %v1017_v12 = vpop.f32.mrb[15].mxu1 }
 0x136   : > { %v2131_v13 = vpack.c.bf16 %v2648_v6, %v2646_v0 }
 0x137   : > { %2195 = vst [vmem:[%s2622_s13 + $0x18] sm:$0xff] %v2051_v8   ;;  %v1575_v14 = vadd.f32 %v1574_v7, %v1512_v10 }
 0x138   : > { %2211 = vst [vmem:[%s2622_s13 + $0x98] sm:$0xff] %v2131_v13  }
 0x13a   : > { %v892_v15 = vpop.f32.mrb[16].mxu0  ;;  %v2654_v16 = vpop.f32.mrb[16].mxu1 }
 0x13b   : > { %v1442_v17 = vadd.f32 %v1441_v9, %v892_v15  ;;  %v1513_v19 = vmul.f32 %v892_v15, %v892_v15  ;;  %v894_v20 = vpop.f32.mrb[17].mxu0  ;;  %v1022_v21 = vpop.f32.mrb[17].mxu1 }
 0x13c   : > { %v895_v22 = vpop.f32.mrb[18].mxu0  ;;  %v2656_v24 = vpop.f32.mrb[18].mxu1 }
 0x13d   : > { %v1576_v25 = vadd.f32 %v1575_v14, %v1513_v19  ;;  %v2056_v26 = vpack.c.bf16 %v895_v22, %v892_v15  ;;  %v1443_v27 = vadd.f32 %v1442_v17, %v895_v22  ;;  %v1514_v28 = vmul.f32 %v895_v22, %v895_v22  ;;  %v897_v29 = vpop.f32.mrb[19].mxu0  ;;  %v1025_v30 = vpop.f32.mrb[19].mxu1 }
 0x13e   : > { %v2136_v31 = vpack.c.bf16 %v2656_v24, %v2654_v16 }
 0x13f   : > { %2196 = vst [vmem:[%s2622_s13 + $0x20] sm:$0xff] %v2056_v26   ;;  %v1577_v33 = vadd.f32 %v1576_v25, %v1514_v28 }
 0x140   : > { %2212 = vst [vmem:[%s2622_s13 + $0xa0] sm:$0xff] %v2136_v31  }
 0x142   : > { %v900_v34 = vpop.f32.mrb[20].mxu0  ;;  %v2662_v35 = vpop.f32.mrb[20].mxu1 }
 0x143   : > { %v1444_v36 = vadd.f32 %v1443_v27, %v900_v34  ;;  %v1515_v37 = vmul.f32 %v900_v34, %v900_v34  ;;  %v902_v39 = vpop.f32.mrb[21].mxu0  ;;  %v1030_v40 = vpop.f32.mrb[21].mxu1 }
 0x144   : > { %v903_v41 = vpop.f32.mrb[22].mxu0  ;;  %v2664_v42 = vpop.f32.mrb[22].mxu1 }
 0x145   : > { %v1578_v43 = vadd.f32 %v1577_v33, %v1515_v37  ;;  %v2061_v44 = vpack.c.bf16 %v903_v41, %v900_v34  ;;  %v1445_v45 = vadd.f32 %v1444_v36, %v903_v41  ;;  %v1516_v46 = vmul.f32 %v903_v41, %v903_v41  ;;  %v905_v47 = vpop.f32.mrb[23].mxu0  ;;  %v1033_v49 = vpop.f32.mrb[23].mxu1 }
 0x146   : > { %v2141_v50 = vpack.c.bf16 %v2664_v42, %v2662_v35 }
 0x147   : > { %2197 = vst [vmem:[%s2622_s13 + $0x28] sm:$0xff] %v2061_v44   ;;  %v1579_v51 = vadd.f32 %v1578_v43, %v1516_v46 }
 0x148   : > { %2213 = vst [vmem:[%s2622_s13 + $0xa8] sm:$0xff] %v2141_v50  }
 0x14a   : > { %v908_v52 = vpop.f32.mrb[24].mxu0  ;;  %v2670_v53 = vpop.f32.mrb[24].mxu1 }
 0x14b   : > { %v1446_v55 = vadd.f32 %v1445_v45, %v908_v52  ;;  %v1517_v56 = vmul.f32 %v908_v52, %v908_v52  ;;  %v910_v57 = vpop.f32.mrb[25].mxu0  ;;  %v1038_v58 = vpop.f32.mrb[25].mxu1 }
 0x14c   : > { %v911_v59 = vpop.f32.mrb[26].mxu0  ;;  %v2672_v60 = vpop.f32.mrb[26].mxu1 }
 0x14d   : > { %v1580_v61 = vadd.f32 %v1579_v51, %v1517_v56  ;;  %v2066_v62 = vpack.c.bf16 %v911_v59, %v908_v52  ;;  %v1447_v63 = vadd.f32 %v1446_v55, %v911_v59  ;;  %v1518_v1 = vmul.f32 %v911_v59, %v911_v59  ;;  %v913_v2 = vpop.f32.mrb[27].mxu0  ;;  %v1041_v3 = vpop.f32.mrb[27].mxu1 }
 0x14e   : > { %v2146_v4 = vpack.c.bf16 %v2672_v60, %v2670_v53 }
 0x14f   : > { %2198 = vst [vmem:[%s2622_s13 + $0x30] sm:$0xff] %v2066_v62   ;;  %v1581_v5 = vadd.f32 %v1580_v61, %v1518_v1 }
 0x150   : > { %2214 = vst [vmem:[%s2622_s13 + $0xb0] sm:$0xff] %v2146_v4  }
 0x152   : > { %v916_v7 = vpop.f32.mrb[28].mxu0  ;;  %v2678_v8 = vpop.f32.mrb[28].mxu1 }
 0x153   : > { %v1448_v9 = vadd.f32 %v1447_v63, %v916_v7  ;;  %v1519_v10 = vmul.f32 %v916_v7, %v916_v7  ;;  %v918_v11 = vpop.f32.mrb[29].mxu0  ;;  %v1046_v12 = vpop.f32.mrb[29].mxu1 }
 0x154   : > { %v919_v13 = vpop.f32.mrb[30].mxu0  ;;  %v2680_v14 = vpop.f32.mrb[30].mxu1 }
 0x155   : > { %v1582_v15 = vadd.f32 %v1581_v5, %v1519_v10  ;;  %v2071_v17 = vpack.c.bf16 %v919_v13, %v916_v7  ;;  %v1449_v19 = vadd.f32 %v1448_v9, %v919_v13  ;;  %v1520_v20 = vmul.f32 %v919_v13, %v919_v13  ;;  %v921_v21 = vpop.f32.mrb[31].mxu0  ;;  %v1049_v22 = vpop.f32.mrb[31].mxu1 }
 0x156   : > { %v2151_v25 = vpack.c.bf16 %v2680_v14, %v2678_v8 }
 0x157   : > { %2199 = vst [vmem:[%s2622_s13 + $0x38] sm:$0xff] %v2071_v17   ;;  %v1583_v26 = vadd.f32 %v1582_v15, %v1520_v20 }
 0x158   : > { %2215 = vst [vmem:[%s2622_s13 + $0xb8] sm:$0xff] %v2151_v25  }
 0x15a   : > { %v924_v27 = vpop.f32.mrb[32].mxu0  ;;  %v2686_v28 = vpop.f32.mrb[32].mxu1 }
 0x15b   : > { %v1450_v29 = vadd.f32 %v1449_v19, %v924_v27  ;;  %v1521_v30 = vmul.f32 %v924_v27, %v924_v27  ;;  %v926_v31 = vpop.f32.mrb[33].mxu0  ;;  %v1054_v33 = vpop.f32.mrb[33].mxu1 }
 0x15c   : > { %v927_v34 = vpop.f32.mrb[34].mxu0  ;;  %v2688_v36 = vpop.f32.mrb[34].mxu1 }
 0x15d   : > { %v1584_v37 = vadd.f32 %v1583_v26, %v1521_v30  ;;  %v2076_v39 = vpack.c.bf16 %v927_v34, %v924_v27  ;;  %v1451_v40 = vadd.f32 %v1450_v29, %v927_v34  ;;  %v1522_v41 = vmul.f32 %v927_v34, %v927_v34  ;;  %v929_v43 = vpop.f32.mrb[35].mxu0  ;;  %v1057_v44 = vpop.f32.mrb[35].mxu1 }
 0x15e   : > { %v2156_v45 = vpack.c.bf16 %v2688_v36, %v2686_v28 }
 0x15f   : > { %2200 = vst [vmem:[%s2622_s13 + $0x40] sm:$0xff] %v2076_v39   ;;  %v1585_v46 = vadd.f32 %v1584_v37, %v1522_v41 }
 0x160   : > { %2216 = vst [vmem:[%s2622_s13 + $0xc0] sm:$0xff] %v2156_v45  }
 0x162   : > { %v932_v47 = vpop.f32.mrb[36].mxu0  ;;  %v2694_v49 = vpop.f32.mrb[36].mxu1 }
 0x163   : > { %v1452_v50 = vadd.f32 %v1451_v40, %v932_v47  ;;  %v1523_v51 = vmul.f32 %v932_v47, %v932_v47  ;;  %v934_v52 = vpop.f32.mrb[37].mxu0  ;;  %v1062_v55 = vpop.f32.mrb[37].mxu1 }
 0x164   : > { %v935_v56 = vpop.f32.mrb[38].mxu0  ;;  %v2696_v57 = vpop.f32.mrb[38].mxu1 }
 0x165   : > { %v1586_v58 = vadd.f32 %v1585_v46, %v1523_v51  ;;  %v2081_v59 = vpack.c.bf16 %v935_v56, %v932_v47  ;;  %v1453_v61 = vadd.f32 %v1452_v50, %v935_v56  ;;  %v1524_v62 = vmul.f32 %v935_v56, %v935_v56  ;;  %v937_v63 = vpop.f32.mrb[39].mxu0  ;;  %v1065_v1 = vpop.f32.mrb[39].mxu1 }
 0x166   : > { %v2161_v2 = vpack.c.bf16 %v2696_v57, %v2694_v49 }
 0x167   : > { %2201 = vst [vmem:[%s2622_s13 + $0x48] sm:$0xff] %v2081_v59   ;;  %v1587_v3 = vadd.f32 %v1586_v58, %v1524_v62 }
 0x168   : > { %2217 = vst [vmem:[%s2622_s13 + $0xc8] sm:$0xff] %v2161_v2  }
 0x16a   : > { %v940_v4 = vpop.f32.mrb[40].mxu0  ;;  %v2702_v5 = vpop.f32.mrb[40].mxu1 }
 0x16b   : > { %v1454_v7 = vadd.f32 %v1453_v61, %v940_v4  ;;  %v1525_v9 = vmul.f32 %v940_v4, %v940_v4  ;;  %v942_v10 = vpop.f32.mrb[41].mxu0  ;;  %v1070_v11 = vpop.f32.mrb[41].mxu1 }
 0x16c   : > { %v943_v12 = vpop.f32.mrb[42].mxu0  ;;  %v2704_v13 = vpop.f32.mrb[42].mxu1 }
 0x16d   : > { %v1588_v15 = vadd.f32 %v1587_v3, %v1525_v9  ;;  %v2086_v17 = vpack.c.bf16 %v943_v12, %v940_v4  ;;  %v1455_v19 = vadd.f32 %v1454_v7, %v943_v12  ;;  %v1526_v20 = vmul.f32 %v943_v12, %v943_v12  ;;  %v945_v21 = vpop.f32.mrb[43].mxu0  ;;  %v1073_v22 = vpop.f32.mrb[43].mxu1 }
 0x16e   : > { %v2166_v25 = vpack.c.bf16 %v2704_v13, %v2702_v5 }
 0x16f   : > { %2202 = vst [vmem:[%s2622_s13 + $0x50] sm:$0xff] %v2086_v17   ;;  %v1589_v26 = vadd.f32 %v1588_v15, %v1526_v20 }
 0x170   : > { %2218 = vst [vmem:[%s2622_s13 + $0xd0] sm:$0xff] %v2166_v25  }
 0x172   : > { %v948_v27 = vpop.f32.mrb[44].mxu0  ;;  %v2710_v29 = vpop.f32.mrb[44].mxu1 }
 0x173   : > { %v1456_v30 = vadd.f32 %v1455_v19, %v948_v27  ;;  %v1527_v31 = vmul.f32 %v948_v27, %v948_v27  ;;  %v950_v33 = vpop.f32.mrb[45].mxu0  ;;  %v1078_v34 = vpop.f32.mrb[45].mxu1 }
 0x174   : > { %v951_v37 = vpop.f32.mrb[46].mxu0  ;;  %v2712_v39 = vpop.f32.mrb[46].mxu1 }
 0x175   : > { %v1590_v40 = vadd.f32 %v1589_v26, %v1527_v31  ;;  %v2091_v41 = vpack.c.bf16 %v951_v37, %v948_v27  ;;  %v1457_v43 = vadd.f32 %v1456_v30, %v951_v37  ;;  %v1528_v44 = vmul.f32 %v951_v37, %v951_v37  ;;  %v953_v45 = vpop.f32.mrb[47].mxu0  ;;  %v1081_v46 = vpop.f32.mrb[47].mxu1 }
 0x176   : > { %v2171_v47 = vpack.c.bf16 %v2712_v39, %v2710_v29 }
 0x177   : > { %2203 = vst [vmem:[%s2622_s13 + $0x58] sm:$0xff] %v2091_v41   ;;  %v1591_v50 = vadd.f32 %v1590_v40, %v1528_v44 }
 0x178   : > { %2219 = vst [vmem:[%s2622_s13 + $0xd8] sm:$0xff] %v2171_v47  }
 0x17a   : > { %v956_v51 = vpop.f32.mrb[48].mxu0  ;;  %v2718_v52 = vpop.f32.mrb[48].mxu1 }
 0x17b   : > { %v1458_v55 = vadd.f32 %v1457_v43, %v956_v51  ;;  %v1529_v56 = vmul.f32 %v956_v51, %v956_v51  ;;  %v958_v58 = vpop.f32.mrb[49].mxu0  ;;  %v1086_v59 = vpop.f32.mrb[49].mxu1 }
 0x17c   : > { %v959_v61 = vpop.f32.mrb[50].mxu0  ;;  %v2720_v62 = vpop.f32.mrb[50].mxu1 }
 0x17d   : > { %v1592_v63 = vadd.f32 %v1591_v50, %v1529_v56  ;;  %v2096_v1 = vpack.c.bf16 %v959_v61, %v956_v51  ;;  %v1459_v2 = vadd.f32 %v1458_v55, %v959_v61  ;;  %v1530_v3 = vmul.f32 %v959_v61, %v959_v61  ;;  %v961_v4 = vpop.f32.mrb[51].mxu0  ;;  %v1089_v7 = vpop.f32.mrb[51].mxu1 }
 0x17e   : > { %v2176_v9 = vpack.c.bf16 %v2720_v62, %v2718_v52 }
 0x17f   : > { %2204 = vst [vmem:[%s2622_s13 + $0x60] sm:$0xff] %v2096_v1   ;;  %v1593_v10 = vadd.f32 %v1592_v63, %v1530_v3 }
 0x180   : > { %2220 = vst [vmem:[%s2622_s13 + $0xe0] sm:$0xff] %v2176_v9  }
 0x182   : > { %v964_v11 = vpop.f32.mrb[52].mxu0  ;;  %v2726_v12 = vpop.f32.mrb[52].mxu1 }
 0x183   : > { %v1460_v15 = vadd.f32 %v1459_v2, %v964_v11  ;;  %v1531_v17 = vmul.f32 %v964_v11, %v964_v11  ;;  %v966_v19 = vpop.f32.mrb[53].mxu0  ;;  %v1094_v20 = vpop.f32.mrb[53].mxu1 }
 0x184   : > { %v967_v21 = vpop.f32.mrb[54].mxu0  ;;  %v2728_v22 = vpop.f32.mrb[54].mxu1 }
 0x185   : > { %v1594_v25 = vadd.f32 %v1593_v10, %v1531_v17  ;;  %v2101_v26 = vpack.c.bf16 %v967_v21, %v964_v11  ;;  %v1461_v27 = vadd.f32 %v1460_v15, %v967_v21  ;;  %v1532_v30 = vmul.f32 %v967_v21, %v967_v21  ;;  %v969_v31 = vpop.f32.mrb[55].mxu0  ;;  %v1097_v33 = vpop.f32.mrb[55].mxu1 }
 0x186   : > { %v2181_v34 = vpack.c.bf16 %v2728_v22, %v2726_v12 }
 0x187   : > { %2205 = vst [vmem:[%s2622_s13 + $0x68] sm:$0xff] %v2101_v26   ;;  %v1595_v37 = vadd.f32 %v1594_v25, %v1532_v30  ;;  %v1537_v30 = vmul.f32 %v2617_v18, %v2617_v18 }
 0x188   : > { %2221 = vst [vmem:[%s2622_s13 + $0xe8] sm:$0xff] %v2181_v34   ;;  %v1538_v34 = vmul.f32 %v2624_v23, %v2624_v23 }
 0x18a   : > { %v972_v40 = vpop.f32.mrb[56].mxu0  ;;  %v2734_v41 = vpop.f32.mrb[56].mxu1 }
 0x18b   : > { %v1462_v43 = vadd.f32 %v1461_v27, %v972_v40  ;;  %v1533_v44 = vmul.f32 %v972_v40, %v972_v40  ;;  %v974_v45 = vpop.f32.mrb[57].mxu0  ;;  %v1102_v46 = vpop.f32.mrb[57].mxu1 }
 0x18c   : > { %v975_v47 = vpop.f32.mrb[58].mxu0  ;;  %v2736_v50 = vpop.f32.mrb[58].mxu1  ;;  %v1540_v46 = vmul.f32 %v2632_v38, %v2632_v38 }
 0x18d   : > { %v1596_v51 = vadd.f32 %v1595_v37, %v1533_v44  ;;  %v2106_v55 = vpack.c.bf16 %v975_v47, %v972_v40  ;;  %v1463_v56 = vadd.f32 %v1462_v43, %v975_v47  ;;  %v1534_v58 = vmul.f32 %v975_v47, %v975_v47  ;;  %v977_v59 = vpop.f32.mrb[59].mxu0  ;;  %v1105_v61 = vpop.f32.mrb[59].mxu1 }
 0x18e   : > { %v2186_v63 = vpack.c.bf16 %v2736_v50, %v2734_v41  ;;  %v1539_v43 = vmul.f32 %v2630_v32, %v2630_v32 }
 0x18f   : > { %2206 = vst [vmem:[%s2622_s13 + $0x70] sm:$0xff] %v2106_v55   ;;  %v1597_v1 = vadd.f32 %v1596_v51, %v1534_v58  ;;  %v1541_v51 = vmul.f32 %v2638_v48, %v2638_v48 }
 0x190   : > { %2222 = vst [vmem:[%s2622_s13 + $0xf0] sm:$0xff] %v2186_v63  }
 0x192   : > { %v980_v2 = vpop.f32.mrb[60].mxu0  ;;  %v2742_v3 = vpop.f32.mrb[60].mxu1 }
 0x193   : > { %v1464_v4 = vadd.f32 %v1463_v56, %v980_v2  ;;  %v1535_v7 = vmul.f32 %v980_v2, %v980_v2  ;;  %v982_v9 = vpop.f32.mrb[61].mxu0  ;;  %v1110_v10 = vpop.f32.mrb[61].mxu1 }
 0x194   : > { %v983_v11 = vpop.f32.mrb[62].mxu0  ;;  %v2744_v15 = vpop.f32.mrb[62].mxu1 }
 0x195   : > { %v1598_v17 = vadd.f32 %v1597_v1, %v1535_v7  ;;  %v2111_v19 = vpack.c.bf16 %v983_v11, %v980_v2  ;;  %v1465_v20 = vadd.f32 %v1464_v4, %v983_v11  ;;  %v1536_v21 = vmul.f32 %v983_v11, %v983_v11  ;;  %v985_v25 = vpop.f32.mrb[63].mxu0  ;;  %v1113_v26 = vpop.f32.mrb[63].mxu1 }
 0x196   : > { %v2191_v27 = vpack.c.bf16 %v2744_v15, %v2742_v3 }
 0x197   : > { %2207 = vst [vmem:[%s2622_s13 + $0x78] sm:$0xff] %v2111_v19   ;;  %v1466_v31 = vadd.f32 %v1465_v20, %v2617_v18  ;;  %v1599_v33 = vadd.f32 %v1598_v17, %v1536_v21 }
 0x198   : > { %2223 = vst [vmem:[%s2622_s13 + $0xf8] sm:$0xff] %v2191_v27  }
 0x199   : > { %v1467_v37 = vadd.f32 %v1466_v31, %v2624_v23  ;;  %v1600_v40 = vadd.f32 %v1599_v33, %v1537_v30  ;;  %v1542_v23 = vmul.f32 %v2640_v54, %v2640_v54 }
 0x19b   : > { %v1468_v44 = vadd.f32 %v1467_v37, %v2630_v32  ;;  %v1601_v45 = vadd.f32 %v1600_v40, %v1538_v34  ;;  %v1543_v32 = vmul.f32 %v2646_v0, %v2646_v0  ;;  %v1553_v37 = vmul.f32 %v2686_v28, %v2686_v28 }
 0x19d   : > { %v1469_v47 = vadd.f32 %v1468_v44, %v2632_v38  ;;  %v1602_v18 = vadd.f32 %v1601_v45, %v1539_v43  ;;  %v1544_v38 = vmul.f32 %v2648_v6, %v2648_v6  ;;  %v1554_v44 = vmul.f32 %v2688_v36, %v2688_v36 }
 0x19f   : > { %v1470_v55 = vadd.f32 %v1469_v47, %v2638_v48  ;;  %v1603_v56 = vadd.f32 %v1602_v18, %v1540_v46  ;;  %v1545_v48 = vmul.f32 %v2654_v16, %v2654_v16  ;;  %v1555_v46 = vmul.f32 %v2694_v49, %v2694_v49 }
 0x1a0   : > { %v1556_v18 = vmul.f32 %v2696_v57, %v2696_v57 }
 0x1a1   : > { %v1471_v58 = vadd.f32 %v1470_v55, %v2640_v54  ;;  %v1604_v59 = vadd.f32 %v1603_v56, %v1541_v51  ;;  %v1546_v54 = vmul.f32 %v2656_v24, %v2656_v24  ;;  %v1557_v55 = vmul.f32 %v2702_v5, %v2702_v5 }
 0x1a3   : > { %v1472_v61 = vadd.f32 %v1471_v58, %v2646_v0  ;;  %v1605_v63 = vadd.f32 %v1604_v59, %v1542_v23  ;;  %v1547_v0 = vmul.f32 %v2662_v35, %v2662_v35  ;;  %v1558_v23 = vmul.f32 %v2704_v13, %v2704_v13 }
 0x1a4   : > { %v1559_v59 = vmul.f32 %v2710_v29, %v2710_v29 }
 0x1a5   : > { %v1473_v1 = vadd.f32 %v1472_v61, %v2648_v6  ;;  %v1606_v2 = vadd.f32 %v1605_v63, %v1543_v32  ;;  %v1548_v6 = vmul.f32 %v2664_v42, %v2664_v42  ;;  %v1560_v61 = vmul.f32 %v2712_v39, %v2712_v39 }
 0x1a7   : > { %v1607_v4 = vadd.f32 %v1606_v2, %v1544_v38  ;;  %v1474_v7 = vadd.f32 %v1473_v1, %v2654_v16  ;;  %v1549_v16 = vmul.f32 %v2670_v53, %v2670_v53  ;;  %v1561_v38 = vmul.f32 %v2718_v52, %v2718_v52 }
 0x1a8   : > { %v1562_v2 = vmul.f32 %v2720_v62, %v2720_v62 }
 0x1a9   : > { %v1475_v9 = vadd.f32 %v1474_v7, %v2656_v24  ;;  %v1608_v10 = vadd.f32 %v1607_v4, %v1545_v48  ;;  %v1550_v24 = vmul.f32 %v2672_v60, %v2672_v60  ;;  %v1563_v4 = vmul.f32 %v2726_v12, %v2726_v12 }
 0x1ab   : > { %v1476_v11 = vadd.f32 %v1475_v9, %v2662_v35  ;;  %v1609_v17 = vadd.f32 %v1608_v10, %v1546_v54  ;;  %v1551_v35 = vmul.f32 %v2678_v8, %v2678_v8  ;;  %v1564_v54 = vmul.f32 %v2728_v22, %v2728_v22 }
 0x1ac   : > { %v1565_v10 = vmul.f32 %v2734_v41, %v2734_v41 }
 0x1ad   : > { %v1477_v19 = vadd.f32 %v1476_v11, %v2664_v42  ;;  %v1610_v20 = vadd.f32 %v1609_v17, %v1547_v0  ;;  %v1552_v42 = vmul.f32 %v2680_v14, %v2680_v14  ;;  %v1567_v11 = vmul.f32 %v2742_v3, %v2742_v3 }
 0x1af   : > { %v1478_v21 = vadd.f32 %v1477_v19, %v2670_v53  ;;  %v1611_v25 = vadd.f32 %v1610_v20, %v1548_v6  ;;  %v1568_v20 = vmul.f32 %v2744_v15, %v2744_v15 }
 0x1b1   : > { %v1479_v26 = vadd.f32 %v1478_v21, %v2672_v60  ;;  %v1612_v27 = vadd.f32 %v1611_v25, %v1549_v16 }
 0x1b3   : > { %v1480_v30 = vadd.f32 %v1479_v26, %v2678_v8  ;;  %v1613_v31 = vadd.f32 %v1612_v27, %v1550_v24 }
 0x1b5   : > { %v1481_v33 = vadd.f32 %v1480_v30, %v2680_v14  ;;  %v1614_v34 = vadd.f32 %v1613_v31, %v1551_v35 }
 0x1b7   : > { %v1482_v53 = vadd.f32 %v1481_v33, %v2686_v28  ;;  %v1615_v40 = vadd.f32 %v1614_v34, %v1552_v42 }
 0x1b9   : > { %v1616_v60 = vadd.f32 %v1615_v40, %v1553_v37  ;;  %v1483_v43 = vadd.f32 %v1482_v53, %v2688_v36 }
 0x1bb   : > { %v1617_v8 = vadd.f32 %v1616_v60, %v1554_v44  ;;  %v1484_v45 = vadd.f32 %v1483_v43, %v2694_v49 }
 0x1bd   : > { %v1618_v14 = vadd.f32 %v1617_v8, %v1555_v46  ;;  %v1485_v47 = vadd.f32 %v1484_v45, %v2696_v57 }
 0x1bf   : > { %v1619_v28 = vadd.f32 %v1618_v14, %v1556_v18  ;;  %v1486_v51 = vadd.f32 %v1485_v47, %v2702_v5 }
 0x1c1   : > { %v1620_v56 = vadd.f32 %v1619_v28, %v1557_v55  ;;  %v1487_v36 = vadd.f32 %v1486_v51, %v2704_v13 }
 0x1c3   : > { %v1621_v58 = vadd.f32 %v1620_v56, %v1558_v23  ;;  %v1488_v49 = vadd.f32 %v1487_v36, %v2710_v29 }
 0x1c5   : > { %v1622_v32 = vadd.f32 %v1621_v58, %v1559_v59  ;;  %v1489_v57 = vadd.f32 %v1488_v49, %v2712_v39 }
 0x1c7   : > { %v1623_v63 = vadd.f32 %v1622_v32, %v1560_v61  ;;  %v1490_v5 = vadd.f32 %v1489_v57, %v2718_v52 }
 0x1c9   : > { %v1624_v1 = vadd.f32 %v1623_v63, %v1561_v38  ;;  %v1491_v13 = vadd.f32 %v1490_v5, %v2720_v62 }
 0x1cb   : > { %v1625_v48 = vadd.f32 %v1624_v1, %v1562_v2  ;;  %v1492_v29 = vadd.f32 %v1491_v13, %v2726_v12  ;;  %v1566_v12 = vmul.f32 %v2736_v50, %v2736_v50 }
 0x1cd   : > { %v1626_v7 = vadd.f32 %v1625_v48, %v1563_v4  ;;  %v1493_v39 = vadd.f32 %v1492_v29, %v2728_v22 }
 0x1cf   : > { %v1627_v52 = vadd.f32 %v1626_v7, %v1564_v54  ;;  %v1494_v9 = vadd.f32 %v1493_v39, %v2734_v41 }
 0x1d1   : > { %v1628_v62 = vadd.f32 %v1627_v52, %v1565_v10  ;;  %v1495_v0 = vadd.f32 %v1494_v9, %v2736_v50 }
 0x1d3   : > { %v1629_v17 = vadd.f32 %v1628_v62, %v1566_v12  ;;  %v1496_v6 = vadd.f32 %v1495_v0, %v2742_v3 }
 0x1d5   : > { %v1630_v22 = vadd.f32 %v1629_v17, %v1567_v11  ;;  %v1497_v19 = vadd.f32 %v1496_v6, %v2744_v15 }
 0x1d7   : > { %v1498_v41 = vrot.slane %v1497_v19, 4  ;;  %v1631_v16 = vadd.f32 %v1630_v22, %v1568_v20 }
 0x1d9   : > { %v1499_v21 = vadd.f32 %v1498_v41, %v1497_v19  ;;  %v1632_v25 = vrot.slane %v1631_v16, 4 }
 0x1db   : > { %v1500_v24 = vrot.slane %v1499_v21, 2  ;;  %v1633_v26 = vadd.f32 %v1632_v25, %v1631_v16 }
 0x1dd   : > { %v1501_v50 = vadd.f32 %v1500_v24, %v1499_v21  ;;  %v1634_v27 = vrot.slane %v1633_v26, 2 }
 0x1df   : > { %v1502_v35 = vrot.slane %v1501_v50, 1  ;;  %v1635_v30 = vadd.f32 %v1634_v27, %v1633_v26 }
 0x1e1   : > { %v1503_v3 = vadd.f32 %v1502_v35, %v1501_v50  ;;  %v1636_v31 = vrot.slane %v1635_v30, 1 }
 0x1e3   : > { %1504 = vst [vmem:[%s306_s14] sm:$0x1] %v1503_v3  ;;  %v1637_v15 = vadd.f32 %v1636_v31, %v1635_v30 }
 0x1e5   : > { %1638 = vst [vmem:[%s312_s22] sm:$0x1] %v1637_v15 }
 0x1e6 PF: > { %s15_s17 = sadd.s32 1, %s2415_s17   ;;  %s2868_s15 = smov %s2411_s16 }
 0x1e7   : > { %p12_p6 = scmp.ge.s32.totalorder %s15_s17, 6   ;;  %s2869_s16 = smov %s2871_s18 }
 0x1e9   :  { %14 = sbr.rel (!%p12_p6) target bundleno = 2 (0x2), region = 85 }

</bundles_post_ra>
